<compile_context>
chip_gen: v7x
topology: tpu7x:2x2x1
jax: 0.10.0
libtpu: 0.0.40
codegen_flags: <defaults>
</compile_context>

<pallas_src>
import jax
import jax.numpy as jnp
from jax.experimental import pallas as pl
from jax.experimental.pallas import tpu as pltpu


# ----------------------------------------------------------------------------
# Fused BiUNet kernel builder
# ----------------------------------------------------------------------------
def _build_biunet_kernel(*, depth, K, pad, mxu_dtype=None):
    """Returns the fused kernel body.  All activations are register values in
    channels-last layout (Bc, L, C); no VMEM scratch is used."""

    def kernel(*refs):
        it = iter(refs)
        x_ref = next(it)                                        # (Bc, L, vocab)
        enc_wb = [(next(it), next(it)) for _ in range(depth)]   # (K,Cin,Cout),(1,Cout)
        dec_wb = [(next(it), next(it)) for _ in range(depth)]
        out_ref = next(it)                                      # (Bc, L, vocab)
        lat_ref = next(it)                                      # (Bc, L_lat, C_lat)

        Bc = x_ref.shape[0]

        def conv_same(h, w_ref, b_ref, relu):
            # Conv1d(stride=1, 'same') on channels-last h: (Bc, Lc, Cin).
            # K shifted matmuls with the batch folded into M: each tap is a
            # (Bc*Lc, Cin) @ (Cin, Cout) MXU matmul, f32 accumulation.
            _, Lc, Cin = h.shape
            w = w_ref[...]                                      # (K, Cin, Cout)
            if mxu_dtype is not None:
                w = w.astype(mxu_dtype)
            Cout = w.shape[2]
            if pad > 0:
                z = jnp.zeros((Bc, pad, Cin), h.dtype)
                hp = jnp.concatenate([z, h, z], axis=1)         # per-sample halos
            else:
                hp = h
            acc = None
            for k in range(K):
                lhs = hp[:, k:k + Lc, :].reshape(Bc * Lc, Cin)
                if mxu_dtype is not None:
                    lhs = lhs.astype(mxu_dtype)
                t = jax.lax.dot_general(
                    lhs, w[k],
                    dimension_numbers=(((1,), (0,)), ((), ())),
                    preferred_element_type=jnp.float32)
                acc = t if acc is None else acc + t
            acc = acc + b_ref[...]                              # (1, Cout) bias
            acc = acc.reshape(Bc, Lc, Cout)
            if relu:
                acc = jnp.maximum(acc, 0.0)
            return acc

        # ------------------------------ Encoder ------------------------------
        h = x_ref[...]
        skips = []
        for i in range(depth):
            h = conv_same(h, enc_wb[i][0], enc_wb[i][1], relu=True)
            if i < depth - 1:
                skips.append(h)                    # pre-pool skip stays in regs
                Lc, C = h.shape[1], h.shape[2]
                # Vectorized MaxPool1d(2,2): one reshape + one max, no per-row
                # stores (was the binding vst-slot cost).
                hr = h.reshape(Bc, Lc // 2, 2, C)
                h = jnp.maximum(hr[:, :, 0, :], hr[:, :, 1, :])
                # TODO(synk): dropout is identity (eval mode).
        latent = h                                 # (Bc, L_lat, C_lat), post-ReLU
        # Emit latent lane-dense (channels last); wrapper transposes to (B,C,L).
        lat_ref[...] = latent.astype(lat_ref.dtype)

        # ------------------------------ Decoder ------------------------------
        for d in range(depth):
            if d < depth - 1:
                Lc, C = h.shape[1], h.shape[2]
                # Vectorized nearest-neighbor x2 upsample: in-register
                # interleave (stack + reshape), single value, no row stores.
                up = jnp.concatenate([h[:, :, None, :], h[:, :, None, :]],
                                     axis=2).reshape(Bc, 2 * Lc, C)
                y = conv_same(up, dec_wb[d][0], dec_wb[d][1], relu=True)
                h = y + skips[depth - 2 - d]        # skip add (dropout = id)
            else:
                y = conv_same(h, dec_wb[d][0], dec_wb[d][1], relu=False)
                # reconstructed channel 0 = -inf (channel axis is the lane axis
                # here); folded into the single output store.
                ch_idx = jax.lax.broadcasted_iota(jnp.int32, y.shape, 2)
                y = jnp.where(ch_idx == 0, -jnp.inf, y)
                out_ref[...] = y.astype(out_ref.dtype)

    return kernel


# ----------------------------------------------------------------------------
# Wrapper: one pallas_call for the whole network
# ----------------------------------------------------------------------------
def biunet_forward(x, params, *, kernel_size, batch_block=None, mxu_dtype=None):
    """x: (B, L, vocab) f32 (what the PyTorch module receives before its
    internal transpose).  Returns (reconstructed (B, L, vocab),
    latent (B, C_latent, L_latent)) -- same as the PyTorch module."""
    B, L, vocab = x.shape
    K = kernel_size
    pad = (K - 1) // 2
    enc_params = params["enc"]
    dec_params = params["dec"]
    depth = len(enc_params)
    assert L % (2 ** (depth - 1)) == 0, "L must be divisible by 2**(depth-1)"

    if batch_block is None:
        batch_block = B                   # fold whole batch into the matmul M
    assert B % batch_block == 0
    n_blk = B // batch_block

    L_lat = L // (2 ** (depth - 1))
    C_lat = enc_params[-1][0].shape[2]

    kernel = _build_biunet_kernel(depth=depth, K=K, pad=pad, mxu_dtype=mxu_dtype)

    inputs = [x]
    in_specs = [pl.BlockSpec((batch_block, L, vocab), lambda g: (g, 0, 0))]
    for (w, bb) in enc_params + dec_params:
        inputs += [w, bb]
        in_specs += [pl.BlockSpec(w.shape, lambda g: (0, 0, 0)),
                     pl.BlockSpec(bb.shape, lambda g: (0, 0))]

    out_shape = (jax.ShapeDtypeStruct((B, L, vocab), jnp.float32),
                 jax.ShapeDtypeStruct((B, L_lat, C_lat), jnp.float32))
    out_specs = (pl.BlockSpec((batch_block, L, vocab), lambda g: (g, 0, 0)),
                 pl.BlockSpec((batch_block, L_lat, C_lat), lambda g: (g, 0, 0)))

    out, lat_nc = pl.pallas_call(
        kernel,
        grid=(n_blk,),
        in_specs=in_specs,
        out_specs=out_specs,
        out_shape=out_shape,
        compiler_params=pltpu.CompilerParams(
            # Independent batch chunks.  On v7x, pass batch_block=B//2 and use
            # core-parallel semantics to shard the 2 chunks across TensorCores.
            dimension_semantics=("parallel",)),
    )(*inputs)

    # Latent is emitted lane-dense (B, L_lat, C_lat) by the kernel; the tiny
    # transpose to PyTorch's (B, C_lat, L_lat) is effectively free here.
    return out, jnp.transpose(lat_nc, (0, 2, 1))


# ----------------------------------------------------------------------------
# Parameter construction (deterministic, matches nn.Conv1d default init scale)
# ----------------------------------------------------------------------------
def _init_conv(key, cin, cout, k):
    wkey, bkey = jax.random.split(key)
    bound = 1.0 / (cin * k) ** 0.5
    # Stored as (K, Cin, Cout) == PyTorch weight (Cout, Cin, K) transposed.
    w = jax.random.uniform(wkey, (k, cin, cout), jnp.float32, -bound, bound)
    b = jax.random.uniform(bkey, (1, cout), jnp.float32, -bound, bound)
    return w, b


def init_biunet_params(key, *, vocab_size, nchannels, depth, kernel_size):
    enc, dec = [], []
    cur = vocab_size                      # bioAware = False
    for i in range(depth):
        nxt = nchannels * 2 ** i
        key, sub = jax.random.split(key)
        enc.append(_init_conv(sub, cur, nxt, kernel_size))
        cur = nxt
    for i in range(depth - 1, -1, -1):
        nxt = nchannels * 2 ** max(i - 1, 0) if i > 0 else vocab_size
        key, sub = jax.random.split(key)
        dec.append(_init_conv(sub, cur, nxt, kernel_size))
        cur = nxt
    return {"enc": enc, "dec": dec}


# ----------------------------------------------------------------------------
# Pure-JAX (XLA) reference of the same forward pass, for self-checking
# ----------------------------------------------------------------------------
def _reference_forward(x, params, *, kernel_size):
    pad = (kernel_size - 1) // 2

    def conv(h, w, b, relu):
        L = h.shape[1]
        hp = jnp.pad(h, ((0, 0), (pad, pad), (0, 0)))
        acc = None
        for k in range(w.shape[0]):
            # Force full f32 precision so the tolerance check can be tight.
            t = jnp.einsum("blc,cd->bld", hp[:, k:k + L, :], w[k],
                           precision=jax.lax.Precision.HIGHEST)
            acc = t if acc is None else acc + t
        acc = acc + b
        return jnp.maximum(acc, 0.0) if relu else acc

    skips = []
    h = x
    for (w, b) in params["enc"][:-1]:
        h = conv(h, w, b, relu=True)
        skips.append(h)
        h = jnp.maximum(h[:, 0::2, :], h[:, 1::2, :])
    latent = conv(h, *params["enc"][-1], relu=True)
    h = latent
    for i, (w, b) in enumerate(params["dec"][:-1]):
        h = jnp.repeat(h, 2, axis=1)
        h = conv(h, w, b, relu=True) + skips[-(i + 1)]
    out = conv(h, *params["dec"][-1], relu=False)
    return out, jnp.transpose(latent, (0, 2, 1))


# ----------------------------------------------------------------------------
if __name__ == "__main__":
    # Small config implied by the module: vocabSize=6, nchannels=4, depth=3,
    # kernelSize=3, stride=1, dropout in eval mode (identity).
    VOCAB, NCH, DEPTH, KSIZE = 6, 4, 3, 3
    B, L = 2, 16

    key = jax.random.PRNGKey(0)
    pkey, xkey = jax.random.split(key)
    params = init_biunet_params(pkey, vocab_size=VOCAB, nchannels=NCH,
                                depth=DEPTH, kernel_size=KSIZE)
    # Input in (B, L, vocab) layout (what PyTorch receives before its internal
    # transpose(1, 2)).
    x = jax.random.normal(xkey, (B, L, VOCAB), dtype=jnp.float32)

    fwd = jax.jit(lambda x: biunet_forward(x, params, kernel_size=KSIZE))
    reconstructed, latent = fwd(x)
    jax.block_until_ready((reconstructed, latent))

    assert reconstructed.shape == (B, L, VOCAB)
    assert latent.shape == (B, NCH * 2 ** (DEPTH - 1), L // 2 ** (DEPTH - 1))
    assert bool(jnp.all(jnp.isneginf(reconstructed[:, :, 0])))

    # Numerical cross-check against the pure-JAX reference.  Both sides are
    # full f32, so the tolerance is tight (was 5e-2 previously).
    ref_out, ref_lat = _reference_forward(x, params, kernel_size=KSIZE)
    assert bool(jnp.allclose(reconstructed[:, :, 1:], ref_out[:, :, 1:],
                             atol=1e-4, rtol=1e-4))
    assert bool(jnp.allclose(latent, ref_lat, atol=1e-4, rtol=1e-4))

    print("KERNEL_OK")
</pallas_src>

<mosaic_0001>
module attributes {stable_mosaic.version = 11 : i64} {
  func.func @kernel(%arg0: i32, %arg1: memref<2x16x6xf32, #tpu.memory_space<vmem>>, %arg2: memref<3x6x4xf32, #tpu.memory_space<vmem>>, %arg3: memref<1x4xf32, #tpu.memory_space<vmem>>, %arg4: memref<3x4x8xf32, #tpu.memory_space<vmem>>, %arg5: memref<1x8xf32, #tpu.memory_space<vmem>>, %arg6: memref<3x8x16xf32, #tpu.memory_space<vmem>>, %arg7: memref<1x16xf32, #tpu.memory_space<vmem>>, %arg8: memref<3x16x8xf32, #tpu.memory_space<vmem>>, %arg9: memref<1x8xf32, #tpu.memory_space<vmem>>, %arg10: memref<3x8x4xf32, #tpu.memory_space<vmem>>, %arg11: memref<1x4xf32, #tpu.memory_space<vmem>>, %arg12: memref<3x4x6xf32, #tpu.memory_space<vmem>>, %arg13: memref<1x6xf32, #tpu.memory_space<vmem>>, %arg14: memref<2x16x6xf32, #tpu.memory_space<vmem>>, %arg15: memref<2x4x16xf32, #tpu.memory_space<vmem>>) attributes {dimension_semantics = [#tpu.dimension_semantics<parallel>], iteration_bounds = array<i64: 1>, scalar_prefetch = 0 : i64, scratch_operands = 0 : i64, tpu.core_type = #tpu.core_type<tc>, window_params = [{transform_indices = @transform_0, window_bounds = array<i64: 2, 16, 6>}, {pipeline_mode = #tpu.pipeline_mode<synchronous>, transform_indices = @transform_1, window_bounds = array<i64: 3, 6, 4>}, {pipeline_mode = #tpu.pipeline_mode<synchronous>, transform_indices = @transform_2, window_bounds = array<i64: 1, 4>}, {pipeline_mode = #tpu.pipeline_mode<synchronous>, transform_indices = @transform_3, window_bounds = array<i64: 3, 4, 8>}, {pipeline_mode = #tpu.pipeline_mode<synchronous>, transform_indices = @transform_4, window_bounds = array<i64: 1, 8>}, {pipeline_mode = #tpu.pipeline_mode<synchronous>, transform_indices = @transform_5, window_bounds = array<i64: 3, 8, 16>}, {pipeline_mode = #tpu.pipeline_mode<synchronous>, transform_indices = @transform_6, window_bounds = array<i64: 1, 16>}, {pipeline_mode = #tpu.pipeline_mode<synchronous>, transform_indices = @transform_7, window_bounds = array<i64: 3, 16, 8>}, {pipeline_mode = #tpu.pipeline_mode<synchronous>, transform_indices = @transform_8, window_bounds = array<i64: 1, 8>}, {pipeline_mode = #tpu.pipeline_mode<synchronous>, transform_indices = @transform_9, window_bounds = array<i64: 3, 8, 4>}, {pipeline_mode = #tpu.pipeline_mode<synchronous>, transform_indices = @transform_10, window_bounds = array<i64: 1, 4>}, {pipeline_mode = #tpu.pipeline_mode<synchronous>, transform_indices = @transform_11, window_bounds = array<i64: 3, 4, 6>}, {pipeline_mode = #tpu.pipeline_mode<synchronous>, transform_indices = @transform_12, window_bounds = array<i64: 1, 6>}, {transform_indices = @transform_13, window_bounds = array<i64: 2, 16, 6>}, {transform_indices = @transform_14, window_bounds = array<i64: 2, 4, 16>}]} {
    %c0 = arith.constant 0 : index
    %c0_0 = arith.constant 0 : index
    %c0_1 = arith.constant 0 : index
    %0 = vector.load %arg1[%c0, %c0_0, %c0_1] : memref<2x16x6xf32, #tpu.memory_space<vmem>>, vector<2x16x6xf32>
    %c0_2 = arith.constant 0 : index
    %c0_3 = arith.constant 0 : index
    %c0_4 = arith.constant 0 : index
    %1 = vector.load %arg2[%c0_2, %c0_3, %c0_4] : memref<3x6x4xf32, #tpu.memory_space<vmem>>, vector<3x6x4xf32>
    %cst = arith.constant 0.000000e+00 : f32
    %2 = vector.broadcast %cst : f32 to vector<2x1x6xf32>
    %3 = tpu.concatenate %2, %0, %2 in 1 : vector<2x1x6xf32>, vector<2x16x6xf32>, vector<2x1x6xf32> -> vector<2x18x6xf32>
    %4 = vector.extract_strided_slice %3 {offsets = [0, 0, 0], sizes = [2, 16, 6], strides = [1, 1, 1]} : vector<2x18x6xf32> to vector<2x16x6xf32>
    %5 = vector.shape_cast %4 : vector<2x16x6xf32> to vector<32x6xf32>
    %6 = vector.extract_strided_slice %1 {offsets = [0, 0, 0], sizes = [1, 6, 4], strides = [1, 1, 1]} : vector<3x6x4xf32> to vector<1x6x4xf32>
    %7 = vector.shape_cast %6 : vector<1x6x4xf32> to vector<6x4xf32>
    %cst_5 = arith.constant dense<0.000000e+00> : vector<32x4xf32>
    %8 = tpu.matmul %5, %7, %cst_5 {dimension_numbers = #tpu.dot_dimension_numbers<[1], [0], [0], [1], [0, 0, 1, 1], [], []>} : vector<32x6xf32>, vector<6x4xf32>, vector<32x4xf32> -> vector<32x4xf32>
    %9 = vector.extract_strided_slice %3 {offsets = [0, 1, 0], sizes = [2, 16, 6], strides = [1, 1, 1]} : vector<2x18x6xf32> to vector<2x16x6xf32>
    %10 = vector.shape_cast %9 : vector<2x16x6xf32> to vector<32x6xf32>
    %11 = vector.extract_strided_slice %1 {offsets = [1, 0, 0], sizes = [1, 6, 4], strides = [1, 1, 1]} : vector<3x6x4xf32> to vector<1x6x4xf32>
    %12 = vector.shape_cast %11 : vector<1x6x4xf32> to vector<6x4xf32>
    %cst_6 = arith.constant dense<0.000000e+00> : vector<32x4xf32>
    %13 = tpu.matmul %10, %12, %cst_6 {dimension_numbers = #tpu.dot_dimension_numbers<[1], [0], [0], [1], [0, 0, 1, 1], [], []>} : vector<32x6xf32>, vector<6x4xf32>, vector<32x4xf32> -> vector<32x4xf32>
    %14 = arith.addf %8, %13 : vector<32x4xf32>
    %15 = vector.extract_strided_slice %3 {offsets = [0, 2, 0], sizes = [2, 16, 6], strides = [1, 1, 1]} : vector<2x18x6xf32> to vector<2x16x6xf32>
    %16 = vector.shape_cast %15 : vector<2x16x6xf32> to vector<32x6xf32>
    %17 = vector.extract_strided_slice %1 {offsets = [2, 0, 0], sizes = [1, 6, 4], strides = [1, 1, 1]} : vector<3x6x4xf32> to vector<1x6x4xf32>
    %18 = vector.shape_cast %17 : vector<1x6x4xf32> to vector<6x4xf32>
    %cst_7 = arith.constant dense<0.000000e+00> : vector<32x4xf32>
    %19 = tpu.matmul %16, %18, %cst_7 {dimension_numbers = #tpu.dot_dimension_numbers<[1], [0], [0], [1], [0, 0, 1, 1], [], []>} : vector<32x6xf32>, vector<6x4xf32>, vector<32x4xf32> -> vector<32x4xf32>
    %20 = arith.addf %14, %19 : vector<32x4xf32>
    %c0_8 = arith.constant 0 : index
    %c0_9 = arith.constant 0 : index
    %21 = vector.load %arg3[%c0_8, %c0_9] : memref<1x4xf32, #tpu.memory_space<vmem>>, vector<1x4xf32>
    %22 = vector.broadcast %21 : vector<1x4xf32> to vector<32x4xf32>
    %23 = arith.addf %20, %22 : vector<32x4xf32>
    %24 = vector.shape_cast %23 : vector<32x4xf32> to vector<2x16x4xf32>
    %cst_10 = arith.constant 0.000000e+00 : f32
    %25 = vector.broadcast %cst_10 : f32 to vector<2x16x4xf32>
    %26 = arith.maximumf %24, %25 : vector<2x16x4xf32>
    %27 = vector.shape_cast %26 : vector<2x16x4xf32> to vector<2x8x2x4xf32>
    %28 = vector.extract_strided_slice %27 {offsets = [0, 0, 0, 0], sizes = [2, 8, 1, 4], strides = [1, 1, 1, 1]} : vector<2x8x2x4xf32> to vector<2x8x1x4xf32>
    %29 = vector.shape_cast %28 : vector<2x8x1x4xf32> to vector<2x8x4xf32>
    %30 = vector.extract_strided_slice %27 {offsets = [0, 0, 1, 0], sizes = [2, 8, 1, 4], strides = [1, 1, 1, 1]} : vector<2x8x2x4xf32> to vector<2x8x1x4xf32>
    %31 = vector.shape_cast %30 : vector<2x8x1x4xf32> to vector<2x8x4xf32>
    %32 = arith.maximumf %29, %31 : vector<2x8x4xf32>
    %c0_11 = arith.constant 0 : index
    %c0_12 = arith.constant 0 : index
    %c0_13 = arith.constant 0 : index
    %33 = vector.load %arg4[%c0_11, %c0_12, %c0_13] : memref<3x4x8xf32, #tpu.memory_space<vmem>>, vector<3x4x8xf32>
    %cst_14 = arith.constant 0.000000e+00 : f32
    %34 = vector.broadcast %cst_14 : f32 to vector<2x1x4xf32>
    %35 = tpu.concatenate %34, %32, %34 in 1 : vector<2x1x4xf32>, vector<2x8x4xf32>, vector<2x1x4xf32> -> vector<2x10x4xf32>
    %36 = vector.extract_strided_slice %35 {offsets = [0, 0, 0], sizes = [2, 8, 4], strides = [1, 1, 1]} : vector<2x10x4xf32> to vector<2x8x4xf32>
    %37 = vector.shape_cast %36 : vector<2x8x4xf32> to vector<16x4xf32>
    %38 = vector.extract_strided_slice %33 {offsets = [0, 0, 0], sizes = [1, 4, 8], strides = [1, 1, 1]} : vector<3x4x8xf32> to vector<1x4x8xf32>
    %39 = vector.shape_cast %38 : vector<1x4x8xf32> to vector<4x8xf32>
    %cst_15 = arith.constant dense<0.000000e+00> : vector<16x8xf32>
    %40 = tpu.matmul %37, %39, %cst_15 {dimension_numbers = #tpu.dot_dimension_numbers<[1], [0], [0], [1], [0, 0, 1, 1], [], []>} : vector<16x4xf32>, vector<4x8xf32>, vector<16x8xf32> -> vector<16x8xf32>
    %41 = vector.extract_strided_slice %35 {offsets = [0, 1, 0], sizes = [2, 8, 4], strides = [1, 1, 1]} : vector<2x10x4xf32> to vector<2x8x4xf32>
    %42 = vector.shape_cast %41 : vector<2x8x4xf32> to vector<16x4xf32>
    %43 = vector.extract_strided_slice %33 {offsets = [1, 0, 0], sizes = [1, 4, 8], strides = [1, 1, 1]} : vector<3x4x8xf32> to vector<1x4x8xf32>
    %44 = vector.shape_cast %43 : vector<1x4x8xf32> to vector<4x8xf32>
    %cst_16 = arith.constant dense<0.000000e+00> : vector<16x8xf32>
    %45 = tpu.matmul %42, %44, %cst_16 {dimension_numbers = #tpu.dot_dimension_numbers<[1], [0], [0], [1], [0, 0, 1, 1], [], []>} : vector<16x4xf32>, vector<4x8xf32>, vector<16x8xf32> -> vector<16x8xf32>
    %46 = arith.addf %40, %45 : vector<16x8xf32>
    %47 = vector.extract_strided_slice %35 {offsets = [0, 2, 0], sizes = [2, 8, 4], strides = [1, 1, 1]} : vector<2x10x4xf32> to vector<2x8x4xf32>
    %48 = vector.shape_cast %47 : vector<2x8x4xf32> to vector<16x4xf32>
    %49 = vector.extract_strided_slice %33 {offsets = [2, 0, 0], sizes = [1, 4, 8], strides = [1, 1, 1]} : vector<3x4x8xf32> to vector<1x4x8xf32>
    %50 = vector.shape_cast %49 : vector<1x4x8xf32> to vector<4x8xf32>
    %cst_17 = arith.constant dense<0.000000e+00> : vector<16x8xf32>
    %51 = tpu.matmul %48, %50, %cst_17 {dimension_numbers = #tpu.dot_dimension_numbers<[1], [0], [0], [1], [0, 0, 1, 1], [], []>} : vector<16x4xf32>, vector<4x8xf32>, vector<16x8xf32> -> vector<16x8xf32>
    %52 = arith.addf %46, %51 : vector<16x8xf32>
    %c0_18 = arith.constant 0 : index
    %c0_19 = arith.constant 0 : index
    %53 = vector.load %arg5[%c0_18, %c0_19] : memref<1x8xf32, #tpu.memory_space<vmem>>, vector<1x8xf32>
    %54 = vector.broadcast %53 : vector<1x8xf32> to vector<16x8xf32>
    %55 = arith.addf %52, %54 : vector<16x8xf32>
    %56 = vector.shape_cast %55 : vector<16x8xf32> to vector<2x8x8xf32>
    %cst_20 = arith.constant 0.000000e+00 : f32
    %57 = vector.broadcast %cst_20 : f32 to vector<2x8x8xf32>
    %58 = arith.maximumf %56, %57 : vector<2x8x8xf32>
    %59 = vector.shape_cast %58 : vector<2x8x8xf32> to vector<2x4x2x8xf32>
    %60 = vector.extract_strided_slice %59 {offsets = [0, 0, 0, 0], sizes = [2, 4, 1, 8], strides = [1, 1, 1, 1]} : vector<2x4x2x8xf32> to vector<2x4x1x8xf32>
    %61 = vector.shape_cast %60 : vector<2x4x1x8xf32> to vector<2x4x8xf32>
    %62 = vector.extract_strided_slice %59 {offsets = [0, 0, 1, 0], sizes = [2, 4, 1, 8], strides = [1, 1, 1, 1]} : vector<2x4x2x8xf32> to vector<2x4x1x8xf32>
    %63 = vector.shape_cast %62 : vector<2x4x1x8xf32> to vector<2x4x8xf32>
    %64 = arith.maximumf %61, %63 : vector<2x4x8xf32>
    %c0_21 = arith.constant 0 : index
    %c0_22 = arith.constant 0 : index
    %c0_23 = arith.constant 0 : index
    %65 = vector.load %arg6[%c0_21, %c0_22, %c0_23] : memref<3x8x16xf32, #tpu.memory_space<vmem>>, vector<3x8x16xf32>
    %cst_24 = arith.constant 0.000000e+00 : f32
    %66 = vector.broadcast %cst_24 : f32 to vector<2x1x8xf32>
    %67 = tpu.concatenate %66, %64, %66 in 1 : vector<2x1x8xf32>, vector<2x4x8xf32>, vector<2x1x8xf32> -> vector<2x6x8xf32>
    %68 = vector.extract_strided_slice %67 {offsets = [0, 0, 0], sizes = [2, 4, 8], strides = [1, 1, 1]} : vector<2x6x8xf32> to vector<2x4x8xf32>
    %69 = vector.shape_cast %68 : vector<2x4x8xf32> to vector<8x8xf32>
    %70 = vector.extract_strided_slice %65 {offsets = [0, 0, 0], sizes = [1, 8, 16], strides = [1, 1, 1]} : vector<3x8x16xf32> to vector<1x8x16xf32>
    %71 = vector.shape_cast %70 : vector<1x8x16xf32> to vector<8x16xf32>
    %cst_25 = arith.constant dense<0.000000e+00> : vector<8x16xf32>
    %72 = tpu.matmul %69, %71, %cst_25 {dimension_numbers = #tpu.dot_dimension_numbers<[1], [0], [0], [1], [0, 0, 1, 1], [], []>} : vector<8x8xf32>, vector<8x16xf32>, vector<8x16xf32> -> vector<8x16xf32>
    %73 = vector.extract_strided_slice %67 {offsets = [0, 1, 0], sizes = [2, 4, 8], strides = [1, 1, 1]} : vector<2x6x8xf32> to vector<2x4x8xf32>
    %74 = vector.shape_cast %73 : vector<2x4x8xf32> to vector<8x8xf32>
    %75 = vector.extract_strided_slice %65 {offsets = [1, 0, 0], sizes = [1, 8, 16], strides = [1, 1, 1]} : vector<3x8x16xf32> to vector<1x8x16xf32>
    %76 = vector.shape_cast %75 : vector<1x8x16xf32> to vector<8x16xf32>
    %cst_26 = arith.constant dense<0.000000e+00> : vector<8x16xf32>
    %77 = tpu.matmul %74, %76, %cst_26 {dimension_numbers = #tpu.dot_dimension_numbers<[1], [0], [0], [1], [0, 0, 1, 1], [], []>} : vector<8x8xf32>, vector<8x16xf32>, vector<8x16xf32> -> vector<8x16xf32>
    %78 = arith.addf %72, %77 : vector<8x16xf32>
    %79 = vector.extract_strided_slice %67 {offsets = [0, 2, 0], sizes = [2, 4, 8], strides = [1, 1, 1]} : vector<2x6x8xf32> to vector<2x4x8xf32>
    %80 = vector.shape_cast %79 : vector<2x4x8xf32> to vector<8x8xf32>
    %81 = vector.extract_strided_slice %65 {offsets = [2, 0, 0], sizes = [1, 8, 16], strides = [1, 1, 1]} : vector<3x8x16xf32> to vector<1x8x16xf32>
    %82 = vector.shape_cast %81 : vector<1x8x16xf32> to vector<8x16xf32>
    %cst_27 = arith.constant dense<0.000000e+00> : vector<8x16xf32>
    %83 = tpu.matmul %80, %82, %cst_27 {dimension_numbers = #tpu.dot_dimension_numbers<[1], [0], [0], [1], [0, 0, 1, 1], [], []>} : vector<8x8xf32>, vector<8x16xf32>, vector<8x16xf32> -> vector<8x16xf32>
    %84 = arith.addf %78, %83 : vector<8x16xf32>
    %c0_28 = arith.constant 0 : index
    %c0_29 = arith.constant 0 : index
    %85 = vector.load %arg7[%c0_28, %c0_29] : memref<1x16xf32, #tpu.memory_space<vmem>>, vector<1x16xf32>
    %86 = vector.broadcast %85 : vector<1x16xf32> to vector<8x16xf32>
    %87 = arith.addf %84, %86 : vector<8x16xf32>
    %88 = vector.shape_cast %87 : vector<8x16xf32> to vector<2x4x16xf32>
    %cst_30 = arith.constant 0.000000e+00 : f32
    %89 = vector.broadcast %cst_30 : f32 to vector<2x4x16xf32>
    %90 = arith.maximumf %88, %89 : vector<2x4x16xf32>
    %c0_31 = arith.constant 0 : index
    %c0_32 = arith.constant 0 : index
    %c0_33 = arith.constant 0 : index
    %91 = vector.load %arg15[%c0_31, %c0_32, %c0_33] : memref<2x4x16xf32, #tpu.memory_space<vmem>>, vector<2x4x16xf32>
    tpu.vector_store %arg15[%c0_31, %c0_32, %c0_33], %90 {strides = array<i32>} : memref<2x4x16xf32, #tpu.memory_space<vmem>>, vector<2x4x16xf32>,
    %92 = vector.shape_cast %90 : vector<2x4x16xf32> to vector<2x4x1x16xf32>
    %93 = vector.shape_cast %90 : vector<2x4x16xf32> to vector<2x4x1x16xf32>
    %94 = tpu.concatenate %92, %93 in 2 : vector<2x4x1x16xf32>, vector<2x4x1x16xf32> -> vector<2x4x2x16xf32>
    %95 = vector.shape_cast %94 : vector<2x4x2x16xf32> to vector<2x8x16xf32>
    %c0_34 = arith.constant 0 : index
    %c0_35 = arith.constant 0 : index
    %c0_36 = arith.constant 0 : index
    %96 = vector.load %arg8[%c0_34, %c0_35, %c0_36] : memref<3x16x8xf32, #tpu.memory_space<vmem>>, vector<3x16x8xf32>
    %cst_37 = arith.constant 0.000000e+00 : f32
    %97 = vector.broadcast %cst_37 : f32 to vector<2x1x16xf32>
    %98 = tpu.concatenate %97, %95, %97 in 1 : vector<2x1x16xf32>, vector<2x8x16xf32>, vector<2x1x16xf32> -> vector<2x10x16xf32>
    %99 = vector.extract_strided_slice %98 {offsets = [0, 0, 0], sizes = [2, 8, 16], strides = [1, 1, 1]} : vector<2x10x16xf32> to vector<2x8x16xf32>
    %100 = vector.shape_cast %99 : vector<2x8x16xf32> to vector<16x16xf32>
    %101 = vector.extract_strided_slice %96 {offsets = [0, 0, 0], sizes = [1, 16, 8], strides = [1, 1, 1]} : vector<3x16x8xf32> to vector<1x16x8xf32>
    %102 = vector.shape_cast %101 : vector<1x16x8xf32> to vector<16x8xf32>
    %cst_38 = arith.constant dense<0.000000e+00> : vector<16x8xf32>
    %103 = tpu.matmul %100, %102, %cst_38 {dimension_numbers = #tpu.dot_dimension_numbers<[1], [0], [0], [1], [0, 0, 1, 1], [], []>} : vector<16x16xf32>, vector<16x8xf32>, vector<16x8xf32> -> vector<16x8xf32>
    %104 = vector.extract_strided_slice %98 {offsets = [0, 1, 0], sizes = [2, 8, 16], strides = [1, 1, 1]} : vector<2x10x16xf32> to vector<2x8x16xf32>
    %105 = vector.shape_cast %104 : vector<2x8x16xf32> to vector<16x16xf32>
    %106 = vector.extract_strided_slice %96 {offsets = [1, 0, 0], sizes = [1, 16, 8], strides = [1, 1, 1]} : vector<3x16x8xf32> to vector<1x16x8xf32>
    %107 = vector.shape_cast %106 : vector<1x16x8xf32> to vector<16x8xf32>
    %cst_39 = arith.constant dense<0.000000e+00> : vector<16x8xf32>
    %108 = tpu.matmul %105, %107, %cst_39 {dimension_numbers = #tpu.dot_dimension_numbers<[1], [0], [0], [1], [0, 0, 1, 1], [], []>} : vector<16x16xf32>, vector<16x8xf32>, vector<16x8xf32> -> vector<16x8xf32>
    %109 = arith.addf %103, %108 : vector<16x8xf32>
    %110 = vector.extract_strided_slice %98 {offsets = [0, 2, 0], sizes = [2, 8, 16], strides = [1, 1, 1]} : vector<2x10x16xf32> to vector<2x8x16xf32>
    %111 = vector.shape_cast %110 : vector<2x8x16xf32> to vector<16x16xf32>
    %112 = vector.extract_strided_slice %96 {offsets = [2, 0, 0], sizes = [1, 16, 8], strides = [1, 1, 1]} : vector<3x16x8xf32> to vector<1x16x8xf32>
    %113 = vector.shape_cast %112 : vector<1x16x8xf32> to vector<16x8xf32>
    %cst_40 = arith.constant dense<0.000000e+00> : vector<16x8xf32>
    %114 = tpu.matmul %111, %113, %cst_40 {dimension_numbers = #tpu.dot_dimension_numbers<[1], [0], [0], [1], [0, 0, 1, 1], [], []>} : vector<16x16xf32>, vector<16x8xf32>, vector<16x8xf32> -> vector<16x8xf32>
    %115 = arith.addf %109, %114 : vector<16x8xf32>
    %c0_41 = arith.constant 0 : index
    %c0_42 = arith.constant 0 : index
    %116 = vector.load %arg9[%c0_41, %c0_42] : memref<1x8xf32, #tpu.memory_space<vmem>>, vector<1x8xf32>
    %117 = vector.broadcast %116 : vector<1x8xf32> to vector<16x8xf32>
    %118 = arith.addf %115, %117 : vector<16x8xf32>
    %119 = vector.shape_cast %118 : vector<16x8xf32> to vector<2x8x8xf32>
    %cst_43 = arith.constant 0.000000e+00 : f32
    %120 = vector.broadcast %cst_43 : f32 to vector<2x8x8xf32>
    %121 = arith.maximumf %119, %120 : vector<2x8x8xf32>
    %122 = arith.addf %121, %58 : vector<2x8x8xf32>
    %123 = vector.shape_cast %122 : vector<2x8x8xf32> to vector<2x8x1x8xf32>
    %124 = vector.shape_cast %122 : vector<2x8x8xf32> to vector<2x8x1x8xf32>
    %125 = tpu.concatenate %123, %124 in 2 : vector<2x8x1x8xf32>, vector<2x8x1x8xf32> -> vector<2x8x2x8xf32>
    %126 = vector.shape_cast %125 : vector<2x8x2x8xf32> to vector<2x16x8xf32>
    %c0_44 = arith.constant 0 : index
    %c0_45 = arith.constant 0 : index
    %c0_46 = arith.constant 0 : index
    %127 = vector.load %arg10[%c0_44, %c0_45, %c0_46] : memref<3x8x4xf32, #tpu.memory_space<vmem>>, vector<3x8x4xf32>
    %cst_47 = arith.constant 0.000000e+00 : f32
    %128 = vector.broadcast %cst_47 : f32 to vector<2x1x8xf32>
    %129 = tpu.concatenate %128, %126, %128 in 1 : vector<2x1x8xf32>, vector<2x16x8xf32>, vector<2x1x8xf32> -> vector<2x18x8xf32>
    %130 = vector.extract_strided_slice %129 {offsets = [0, 0, 0], sizes = [2, 16, 8], strides = [1, 1, 1]} : vector<2x18x8xf32> to vector<2x16x8xf32>
    %131 = vector.shape_cast %130 : vector<2x16x8xf32> to vector<32x8xf32>
    %132 = vector.extract_strided_slice %127 {offsets = [0, 0, 0], sizes = [1, 8, 4], strides = [1, 1, 1]} : vector<3x8x4xf32> to vector<1x8x4xf32>
    %133 = vector.shape_cast %132 : vector<1x8x4xf32> to vector<8x4xf32>
    %cst_48 = arith.constant dense<0.000000e+00> : vector<32x4xf32>
    %134 = tpu.matmul %131, %133, %cst_48 {dimension_numbers = #tpu.dot_dimension_numbers<[1], [0], [0], [1], [0, 0, 1, 1], [], []>} : vector<32x8xf32>, vector<8x4xf32>, vector<32x4xf32> -> vector<32x4xf32>
    %135 = vector.extract_strided_slice %129 {offsets = [0, 1, 0], sizes = [2, 16, 8], strides = [1, 1, 1]} : vector<2x18x8xf32> to vector<2x16x8xf32>
    %136 = vector.shape_cast %135 : vector<2x16x8xf32> to vector<32x8xf32>
    %137 = vector.extract_strided_slice %127 {offsets = [1, 0, 0], sizes = [1, 8, 4], strides = [1, 1, 1]} : vector<3x8x4xf32> to vector<1x8x4xf32>
    %138 = vector.shape_cast %137 : vector<1x8x4xf32> to vector<8x4xf32>
    %cst_49 = arith.constant dense<0.000000e+00> : vector<32x4xf32>
    %139 = tpu.matmul %136, %138, %cst_49 {dimension_numbers = #tpu.dot_dimension_numbers<[1], [0], [0], [1], [0, 0, 1, 1], [], []>} : vector<32x8xf32>, vector<8x4xf32>, vector<32x4xf32> -> vector<32x4xf32>
    %140 = arith.addf %134, %139 : vector<32x4xf32>
    %141 = vector.extract_strided_slice %129 {offsets = [0, 2, 0], sizes = [2, 16, 8], strides = [1, 1, 1]} : vector<2x18x8xf32> to vector<2x16x8xf32>
    %142 = vector.shape_cast %141 : vector<2x16x8xf32> to vector<32x8xf32>
    %143 = vector.extract_strided_slice %127 {offsets = [2, 0, 0], sizes = [1, 8, 4], strides = [1, 1, 1]} : vector<3x8x4xf32> to vector<1x8x4xf32>
    %144 = vector.shape_cast %143 : vector<1x8x4xf32> to vector<8x4xf32>
    %cst_50 = arith.constant dense<0.000000e+00> : vector<32x4xf32>
    %145 = tpu.matmul %142, %144, %cst_50 {dimension_numbers = #tpu.dot_dimension_numbers<[1], [0], [0], [1], [0, 0, 1, 1], [], []>} : vector<32x8xf32>, vector<8x4xf32>, vector<32x4xf32> -> vector<32x4xf32>
    %146 = arith.addf %140, %145 : vector<32x4xf32>
    %c0_51 = arith.constant 0 : index
    %c0_52 = arith.constant 0 : index
    %147 = vector.load %arg11[%c0_51, %c0_52] : memref<1x4xf32, #tpu.memory_space<vmem>>, vector<1x4xf32>
    %148 = vector.broadcast %147 : vector<1x4xf32> to vector<32x4xf32>
    %149 = arith.addf %146, %148 : vector<32x4xf32>
    %150 = vector.shape_cast %149 : vector<32x4xf32> to vector<2x16x4xf32>
    %cst_53 = arith.constant 0.000000e+00 : f32
    %151 = vector.broadcast %cst_53 : f32 to vector<2x16x4xf32>
    %152 = arith.maximumf %150, %151 : vector<2x16x4xf32>
    %153 = arith.addf %152, %26 : vector<2x16x4xf32>
    %c0_54 = arith.constant 0 : index
    %c0_55 = arith.constant 0 : index
    %c0_56 = arith.constant 0 : index
    %154 = vector.load %arg12[%c0_54, %c0_55, %c0_56] : memref<3x4x6xf32, #tpu.memory_space<vmem>>, vector<3x4x6xf32>
    %cst_57 = arith.constant 0.000000e+00 : f32
    %155 = vector.broadcast %cst_57 : f32 to vector<2x1x4xf32>
    %156 = tpu.concatenate %155, %153, %155 in 1 : vector<2x1x4xf32>, vector<2x16x4xf32>, vector<2x1x4xf32> -> vector<2x18x4xf32>
    %157 = vector.extract_strided_slice %156 {offsets = [0, 0, 0], sizes = [2, 16, 4], strides = [1, 1, 1]} : vector<2x18x4xf32> to vector<2x16x4xf32>
    %158 = vector.shape_cast %157 : vector<2x16x4xf32> to vector<32x4xf32>
    %159 = vector.extract_strided_slice %154 {offsets = [0, 0, 0], sizes = [1, 4, 6], strides = [1, 1, 1]} : vector<3x4x6xf32> to vector<1x4x6xf32>
    %160 = vector.shape_cast %159 : vector<1x4x6xf32> to vector<4x6xf32>
    %cst_58 = arith.constant dense<0.000000e+00> : vector<32x6xf32>
    %161 = tpu.matmul %158, %160, %cst_58 {dimension_numbers = #tpu.dot_dimension_numbers<[1], [0], [0], [1], [0, 0, 1, 1], [], []>} : vector<32x4xf32>, vector<4x6xf32>, vector<32x6xf32> -> vector<32x6xf32>
    %162 = vector.extract_strided_slice %156 {offsets = [0, 1, 0], sizes = [2, 16, 4], strides = [1, 1, 1]} : vector<2x18x4xf32> to vector<2x16x4xf32>
    %163 = vector.shape_cast %162 : vector<2x16x4xf32> to vector<32x4xf32>
    %164 = vector.extract_strided_slice %154 {offsets = [1, 0, 0], sizes = [1, 4, 6], strides = [1, 1, 1]} : vector<3x4x6xf32> to vector<1x4x6xf32>
    %165 = vector.shape_cast %164 : vector<1x4x6xf32> to vector<4x6xf32>
    %cst_59 = arith.constant dense<0.000000e+00> : vector<32x6xf32>
    %166 = tpu.matmul %163, %165, %cst_59 {dimension_numbers = #tpu.dot_dimension_numbers<[1], [0], [0], [1], [0, 0, 1, 1], [], []>} : vector<32x4xf32>, vector<4x6xf32>, vector<32x6xf32> -> vector<32x6xf32>
    %167 = arith.addf %161, %166 : vector<32x6xf32>
    %168 = vector.extract_strided_slice %156 {offsets = [0, 2, 0], sizes = [2, 16, 4], strides = [1, 1, 1]} : vector<2x18x4xf32> to vector<2x16x4xf32>
    %169 = vector.shape_cast %168 : vector<2x16x4xf32> to vector<32x4xf32>
    %170 = vector.extract_strided_slice %154 {offsets = [2, 0, 0], sizes = [1, 4, 6], strides = [1, 1, 1]} : vector<3x4x6xf32> to vector<1x4x6xf32>
    %171 = vector.shape_cast %170 : vector<1x4x6xf32> to vector<4x6xf32>
    %cst_60 = arith.constant dense<0.000000e+00> : vector<32x6xf32>
    %172 = tpu.matmul %169, %171, %cst_60 {dimension_numbers = #tpu.dot_dimension_numbers<[1], [0], [0], [1], [0, 0, 1, 1], [], []>} : vector<32x4xf32>, vector<4x6xf32>, vector<32x6xf32> -> vector<32x6xf32>
    %173 = arith.addf %167, %172 : vector<32x6xf32>
    %c0_61 = arith.constant 0 : index
    %c0_62 = arith.constant 0 : index
    %174 = vector.load %arg13[%c0_61, %c0_62] : memref<1x6xf32, #tpu.memory_space<vmem>>, vector<1x6xf32>
    %175 = vector.broadcast %174 : vector<1x6xf32> to vector<32x6xf32>
    %176 = arith.addf %173, %175 : vector<32x6xf32>
    %177 = vector.shape_cast %176 : vector<32x6xf32> to vector<2x16x6xf32>
    %178 = tpu.iota {dimensions = array<i32: 2>} : vector<2x16x6xi32>
    %c0_i32 = arith.constant 0 : i32
    %179 = vector.broadcast %c0_i32 : i32 to vector<2x16x6xi32>
    %180 = arith.cmpi eq, %178, %179 : vector<2x16x6xi32>
    %cst_63 = arith.constant 0xFF800000 : f32
    %181 = vector.broadcast %cst_63 : f32 to vector<2x16x6xf32>
    %182 = arith.select %180, %181, %177 : vector<2x16x6xi1>, vector<2x16x6xf32>
    %c0_64 = arith.constant 0 : index
    %c0_65 = arith.constant 0 : index
    %c0_66 = arith.constant 0 : index
    %183 = vector.load %arg14[%c0_64, %c0_65, %c0_66] : memref<2x16x6xf32, #tpu.memory_space<vmem>>, vector<2x16x6xf32>
    tpu.vector_store %arg14[%c0_64, %c0_65, %c0_66], %182 {strides = array<i32>} : memref<2x16x6xf32, #tpu.memory_space<vmem>>, vector<2x16x6xf32>,
    return
  }
  func.func @transform_0(%arg0: i32) -> (i32, i32, i32) {
    %c0_i32 = arith.constant 0 : i32
    %c0_i32_0 = arith.constant 0 : i32
    %c0_i32_1 = arith.constant 0 : i32
    return %arg0, %c0_i32, %c0_i32_0 : i32, i32, i32
  }
  func.func @transform_1(%arg0: i32) -> (i32, i32, i32) {
    %c0_i32 = arith.constant 0 : i32
    %c0_i32_0 = arith.constant 0 : i32
    %c0_i32_1 = arith.constant 0 : i32
    %c0_i32_2 = arith.constant 0 : i32
    return %c0_i32, %c0_i32_0, %c0_i32_1 : i32, i32, i32
  }
  func.func @transform_2(%arg0: i32) -> (i32, i32) {
    %c0_i32 = arith.constant 0 : i32
    %c0_i32_0 = arith.constant 0 : i32
    %c0_i32_1 = arith.constant 0 : i32
    return %c0_i32, %c0_i32_0 : i32, i32
  }
  func.func @transform_3(%arg0: i32) -> (i32, i32, i32) {
    %c0_i32 = arith.constant 0 : i32
    %c0_i32_0 = arith.constant 0 : i32
    %c0_i32_1 = arith.constant 0 : i32
    %c0_i32_2 = arith.constant 0 : i32
    return %c0_i32, %c0_i32_0, %c0_i32_1 : i32, i32, i32
  }
  func.func @transform_4(%arg0: i32) -> (i32, i32) {
    %c0_i32 = arith.constant 0 : i32
    %c0_i32_0 = arith.constant 0 : i32
    %c0_i32_1 = arith.constant 0 : i32
    return %c0_i32, %c0_i32_0 : i32, i32
  }
  func.func @transform_5(%arg0: i32) -> (i32, i32, i32) {
    %c0_i32 = arith.constant 0 : i32
    %c0_i32_0 = arith.constant 0 : i32
    %c0_i32_1 = arith.constant 0 : i32
    %c0_i32_2 = arith.constant 0 : i32
    return %c0_i32, %c0_i32_0, %c0_i32_1 : i32, i32, i32
  }
  func.func @transform_6(%arg0: i32) -> (i32, i32) {
    %c0_i32 = arith.constant 0 : i32
    %c0_i32_0 = arith.constant 0 : i32
    %c0_i32_1 = arith.constant 0 : i32
    return %c0_i32, %c0_i32_0 : i32, i32
  }
  func.func @transform_7(%arg0: i32) -> (i32, i32, i32) {
    %c0_i32 = arith.constant 0 : i32
    %c0_i32_0 = arith.constant 0 : i32
    %c0_i32_1 = arith.constant 0 : i32
    %c0_i32_2 = arith.constant 0 : i32
    return %c0_i32, %c0_i32_0, %c0_i32_1 : i32, i32, i32
  }
  func.func @transform_8(%arg0: i32) -> (i32, i32) {
    %c0_i32 = arith.constant 0 : i32
    %c0_i32_0 = arith.constant 0 : i32
    %c0_i32_1 = arith.constant 0 : i32
    return %c0_i32, %c0_i32_0 : i32, i32
  }
  func.func @transform_9(%arg0: i32) -> (i32, i32, i32) {
    %c0_i32 = arith.constant 0 : i32
    %c0_i32_0 = arith.constant 0 : i32
    %c0_i32_1 = arith.constant 0 : i32
    %c0_i32_2 = arith.constant 0 : i32
    return %c0_i32, %c0_i32_0, %c0_i32_1 : i32, i32, i32
  }
  func.func @transform_10(%arg0: i32) -> (i32, i32) {
    %c0_i32 = arith.constant 0 : i32
    %c0_i32_0 = arith.constant 0 : i32
    %c0_i32_1 = arith.constant 0 : i32
    return %c0_i32, %c0_i32_0 : i32, i32
  }
  func.func @transform_11(%arg0: i32) -> (i32, i32, i32) {
    %c0_i32 = arith.constant 0 : i32
    %c0_i32_0 = arith.constant 0 : i32
    %c0_i32_1 = arith.constant 0 : i32
    %c0_i32_2 = arith.constant 0 : i32
    return %c0_i32, %c0_i32_0, %c0_i32_1 : i32, i32, i32
  }
  func.func @transform_12(%arg0: i32) -> (i32, i32) {
    %c0_i32 = arith.constant 0 : i32
    %c0_i32_0 = arith.constant 0 : i32
    %c0_i32_1 = arith.constant 0 : i32
    return %c0_i32, %c0_i32_0 : i32, i32
  }
  func.func @transform_13(%arg0: i32) -> (i32, i32, i32) {
    %c0_i32 = arith.constant 0 : i32
    %c0_i32_0 = arith.constant 0 : i32
    %c0_i32_1 = arith.constant 0 : i32
    return %arg0, %c0_i32, %c0_i32_0 : i32, i32, i32
  }
  func.func @transform_14(%arg0: i32) -> (i32, i32, i32) {
    %c0_i32 = arith.constant 0 : i32
    %c0_i32_0 = arith.constant 0 : i32
    %c0_i32_1 = arith.constant 0 : i32
    return %arg0, %c0_i32, %c0_i32_0 : i32, i32, i32
  }
}

</mosaic_0001>

<bundles_post_ra>
// kernel: _lambda_.1
= control target key start
LH: loop header
LB: loop body
LE: loop exit
PB: predicated region body
PF: predicated region fallthrough
CT: control target
= control target key end

     0   :  { %20 = vsyncpa [#allocation3], 0  ;;  %s4070_s0 = inlined_call_operand.vmem [shape: f32[2,16,6], index: 0, kind: input, shape index: {}]   ;;  %s4071_s1 = inlined_call_operand.hbm [shape: f32[3,6,4], index: 1, kind: input, shape index: {}]   ;;  %s4072_s2 = inlined_call_operand.hbm [shape: f32[1,4], index: 2, kind: input, shape index: {}]   ;;  %s4073_s3 = inlined_call_operand.hbm [shape: f32[3,4,8], index: 3, kind: input, shape index: {}]   ;;  %s4074_s4 = inlined_call_operand.hbm [shape: f32[1,8], index: 4, kind: input, shape index: {}]   ;;  %s4075_s5 = inlined_call_operand.hbm [shape: f32[3,8,16], index: 5, kind: input, shape index: {}]   ;;  %s4076_s6 = inlined_call_operand.hbm [shape: f32[1,16], index: 6, kind: input, shape index: {}]   ;;  %s4077_s7 = inlined_call_operand.vmem [shape: f32[3,16,8], index: 7, kind: input, shape index: {}]   ;;  %s4078_s8 = inlined_call_operand.hbm [shape: f32[1,8], index: 8, kind: input, shape index: {}]   ;;  %s4079_s9 = inlined_call_operand.vmem [shape: f32[3,8,4], index: 9, kind: input, shape index: {}]   ;;  %s4080_s10 = inlined_call_operand.hbm [shape: f32[1,4], index: 10, kind: input, shape index: {}]   ;;  %s4081_s11 = inlined_call_operand.vmem [shape: f32[3,4,6], index: 11, kind: input, shape index: {}]   ;;  %s4082_s12 = inlined_call_operand.vmem [shape: f32[1,6], index: 12, kind: input, shape index: {}]   ;;  %s4083_s13 = inlined_call_operand.vmem [shape: f32[2,16,6], index: 13, kind: output, shape index: {0}]   ;;  %s4084_s14 = inlined_call_operand.hbm [shape: f32[2,4,16], index: 14, kind: output, shape index: {1}]  }
   0x1   :  { %21 = vsyncpa [#allocation6], 0 }
   0x2   :  { %22 = vsyncpa [#allocation9], 0 }
   0x3   :  { %23 = vsyncpa [#allocation12], 0 }
   0x4   :  { %24 = vsyncpa [#allocation15], 0 }
   0x5   :  { %25 = vsyncpa [#allocation4], 0  ;;  %s3453_s29 = smov [#allocation5]   ;;  %s3454_s15 = smov [#allocation8]  }
   0x6   :  { %s46_s30 = sshll.u32 %s3453_s29, 4  ;;  %s68_s16 = sshll.u32 %s3454_s15, 4  ;;  %s47_s30 = int_to_ptr.vmem [resolvable:$true] %s46_s30  ;;  %s69_s16 = int_to_ptr.vmem [resolvable:$true] %s68_s16 }
   0x7   :  { %s3243_s19 = scalar_lea.hbm %s4072_s2, 16 }
   0x8   :  { %p3244_p0 = scmp.ne.s32.totalorder %s4072_s2, %s3243_s19  ;;  %p3247_p1 = scmp.lt.u32.totalorder %s3243_s19, %s4072_s2 }
   0xa   :  { %p3249_p2 = pnand %p3247_p1, %p3244_p0 }
   0xc   :  { %3252 = shalt.err (!%p3249_p2)
}
   0xd   :  { %s3253_s24 = scalar_lea.vmem %s47_s30, 16  ;;  %s3257_s25 = scalar_lea.vmem %s47_s30, 32 }
   0xe   :  { %p3254_p3 = scmp.ne.s32.totalorder %s47_s30, %s3253_s24  ;;  %p3258_p4 = scmp.lt.s32.totalorder %s47_s30, %s47_s30 }
   0xf   :  { %p3259_p5 = scmp.lt.s32.totalorder %s3257_s25, %s3253_s24 }
  0x11   :  { %p3260_p6 = por %p3259_p5, %p3258_p4 }
  0x13   :  { %p3261_p7 = pnand %p3260_p6, %p3254_p3 }
  0x15   :  { %3264 = shalt.err (!%p3261_p7)
}
  0x16   :  { %49 = dma.hbm_to_vmem [thread:$0]  %s4072_s2, 16, %s47_s30, [#allocation6]  }
  0x17   :  { %s3265_s15 = scalar_lea.hbm %s4074_s4, 16 }
  0x18   :  { %p3266_p8 = scmp.ne.s32.totalorder %s4074_s4, %s3265_s15  ;;  %p3269_p9 = scmp.lt.u32.totalorder %s3265_s15, %s4074_s4 }
  0x1a   :  { %p3271_p10 = pnand %p3269_p9, %p3266_p8 }
  0x1c   :  { %3274 = shalt.err (!%p3271_p10)
}
  0x1d   :  { %s3275_s21 = scalar_lea.vmem %s69_s16, 16  ;;  %s3279_s22 = scalar_lea.vmem %s69_s16, 32 }
  0x1e   :  { %p3276_p11 = scmp.ne.s32.totalorder %s69_s16, %s3275_s21  ;;  %p3280_p12 = scmp.lt.s32.totalorder %s69_s16, %s69_s16 }
  0x1f   :  { %p3281_p13 = scmp.lt.s32.totalorder %s3279_s22, %s3275_s21 }
  0x21   :  { %p3282_p0 = por %p3281_p13, %p3280_p12 }
  0x23   :  { %p3283_p1 = pnand %p3282_p0, %p3276_p11 }
  0x25   :  { %3286 = shalt.err (!%p3283_p1)
}
  0x26   :  { %71 = dma.hbm_to_vmem [thread:$0]  %s4074_s4, 16, %s69_s16, [#allocation9]  }
  0x27   :  { %s3455_s23 = smov [#allocation11]   ;;  %s3456_s25 = smov [#allocation2]  }
  0x28   :  { %s90_s24 = sshll.u32 %s3455_s23, 4  ;;  %s33_s26 = sshll.u32 %s3456_s25, 4  ;;  %s91_s24 = int_to_ptr.vmem [resolvable:$true] %s90_s24  ;;  %s3569_s26 = int_to_ptr.vmem [resolvable:$true] %s33_s26 }
  0x29   :  { %s3287_s29 = scalar_lea.hbm %s4076_s6, 16 }
  0x2a   :  { %p3288_p2 = scmp.ne.s32.totalorder %s4076_s6, %s3287_s29  ;;  %p3291_p3 = scmp.lt.u32.totalorder %s3287_s29, %s4076_s6 }
  0x2c   :  { %p3293_p4 = pnand %p3291_p3, %p3288_p2 }
  0x2e   :  { %3296 = shalt.err (!%p3293_p4)
}
  0x2f   :  { %s3297_s4 = scalar_lea.vmem %s91_s24, 16  ;;  %s3301_s16 = scalar_lea.vmem %s91_s24, 32 }
  0x30   :  { %p3298_p5 = scmp.ne.s32.totalorder %s91_s24, %s3297_s4  ;;  %p3302_p6 = scmp.lt.s32.totalorder %s91_s24, %s91_s24 }
  0x31   :  { %p3303_p7 = scmp.lt.s32.totalorder %s3301_s16, %s3297_s4 }
  0x33   :  { %p3304_p8 = por %p3303_p7, %p3302_p6 }
  0x35   :  { %p3305_p9 = pnand %p3304_p8, %p3298_p5 }
  0x37   :  { %3308 = shalt.err (!%p3305_p9)
}
  0x38   :  { %93 = dma.hbm_to_vmem [thread:$0]  %s4076_s6, 16, %s91_s24, [#allocation12]  }
  0x39   :  { %s3309_s30 = scalar_lea.hbm %s4071_s1, 384 }
  0x3a   :  { %p3310_p10 = scmp.ne.s32.totalorder %s4071_s1, %s3309_s30  ;;  %p3313_p11 = scmp.lt.u32.totalorder %s3309_s30, %s4071_s1 }
  0x3c   :  { %p3315_p12 = pnand %p3313_p11, %p3310_p10 }
  0x3e   :  { %3318 = shalt.err (!%p3315_p12)
}
  0x3f   :  { %s3319_s29 = scalar_lea.vmem %s3569_s26, 384  ;;  %p3324_p0 = scmp.lt.s32.totalorder %s3569_s26, %s3569_s26 }
  0x40   :  { %p3320_p13 = scmp.ne.s32.totalorder %s3569_s26, %s3319_s29  ;;  %p3325_p1 = scmp.lt.s32.totalorder %s3319_s29, %s3319_s29 }
  0x42   :  { %p3326_p2 = por %p3325_p1, %p3324_p0 }
  0x44   :  { %p3327_p3 = pnand %p3326_p2, %p3320_p13 }
  0x46   :  { %3330 = shalt.err (!%p3327_p3)
}
  0x47   :  { %s3457_s6 = smov 128   ;;  %s3458_s24 = smov 8  }
  0x48   :  { %39 = dma.hbm_to_vmem [thread:$0]  %s4071_s1, 384, %s3569_s26, [#allocation3], %s3457_s6, %s3457_s6, %s3458_s24  }
  0x49   :  { %s3459_s18 = smov [#allocation7]   ;;  %s3331_s20 = scalar_lea.hbm %s4073_s3, 192 }
  0x4a   :  { %s55_s19 = sshll.u32 %s3459_s18, 4  ;;  %p3332_p4 = scmp.ne.s32.totalorder %s4073_s3, %s3331_s20  ;;  %s56_s19 = int_to_ptr.vmem [resolvable:$true] %s55_s19 }
  0x4b   :  { %p3335_p5 = scmp.lt.u32.totalorder %s3331_s20, %s4073_s3 }
  0x4d   :  { %p3337_p6 = pnand %p3335_p5, %p3332_p4 }
  0x4f   :  { %3340 = shalt.err (!%p3337_p6)
}
  0x50   :  { %s3341_s23 = scalar_lea.vmem %s56_s19, 192  ;;  %p3346_p8 = scmp.lt.s32.totalorder %s56_s19, %s56_s19 }
  0x51   :  { %p3342_p7 = scmp.ne.s32.totalorder %s56_s19, %s3341_s23  ;;  %p3347_p9 = scmp.lt.s32.totalorder %s3341_s23, %s3341_s23 }
  0x53   :  { %p3348_p10 = por %p3347_p9, %p3346_p8 }
  0x55   :  { %p3349_p11 = pnand %p3348_p10, %p3342_p7 }
  0x57   :  { %3352 = shalt.err (!%p3349_p11)
}
  0x58   :  { %s3460_s1 = smov 64   ;;  %s3461_s26 = smov 4  }
  0x59   :  { %61 = dma.hbm_to_vmem [thread:$0]  %s4073_s3, 192, %s56_s19, [#allocation6], %s3460_s1, %s3460_s1, %s3461_s26  }
  0x5a   :  { %s3462_s28 = smov [#allocation10]   ;;  %s3463_s15 = smov [#allocation13]  }
  0x5b   :  { %s77_s29 = sshll.u32 %s3462_s28, 4  ;;  %s102_s17 = sshll.u32 %s3463_s15, 4  ;;  %s78_s29 = int_to_ptr.vmem [resolvable:$true] %s77_s29  ;;  %s103_s17 = int_to_ptr.vmem [resolvable:$true] %s102_s17 }
  0x5c   :  { %s3353_s16 = scalar_lea.hbm %s4075_s5, 384 }
  0x5d   :  { %p3354_p12 = scmp.ne.s32.totalorder %s4075_s5, %s3353_s16  ;;  %p3357_p13 = scmp.lt.u32.totalorder %s3353_s16, %s4075_s5 }
  0x5f   :  { %p3359_p0 = pnand %p3357_p13, %p3354_p12 }
  0x61   :  { %3362 = shalt.err (!%p3359_p0)
}
  0x62   :  { %s3363_s3 = scalar_lea.vmem %s78_s29, 384  ;;  %p3368_p2 = scmp.lt.s32.totalorder %s78_s29, %s78_s29 }
  0x63   :  { %p3364_p1 = scmp.ne.s32.totalorder %s78_s29, %s3363_s3  ;;  %p3369_p3 = scmp.lt.s32.totalorder %s3363_s3, %s3363_s3 }
  0x65   :  { %p3370_p4 = por %p3369_p3, %p3368_p2 }
  0x67   :  { %p3371_p5 = pnand %p3370_p4, %p3364_p1 }
  0x69   :  { %3374 = shalt.err (!%p3371_p5)
}
  0x6a   :  { %83 = dma.hbm_to_vmem [thread:$0]  %s4075_s5, 384, %s78_s29, [#allocation9], %s3457_s6, %s3457_s6, %s3458_s24  }
  0x6b   :  { %s3375_s27 = scalar_lea.hbm %s4078_s8, 16 }
  0x6c   :  { %p3376_p6 = scmp.ne.s32.totalorder %s4078_s8, %s3375_s27  ;;  %p3379_p7 = scmp.lt.u32.totalorder %s3375_s27, %s4078_s8 }
  0x6e   :  { %p3381_p8 = pnand %p3379_p7, %p3376_p6 }
  0x70   :  { %3384 = shalt.err (!%p3381_p8)
}
  0x71   :  { %s3385_s16 = scalar_lea.vmem %s103_s17, 16  ;;  %s3389_s20 = scalar_lea.vmem %s103_s17, 32 }
  0x72   :  { %p3386_p9 = scmp.ne.s32.totalorder %s103_s17, %s3385_s16  ;;  %p3390_p10 = scmp.lt.s32.totalorder %s103_s17, %s103_s17 }
  0x73   :  { %p3391_p11 = scmp.lt.s32.totalorder %s3389_s20, %s3385_s16 }
  0x75   :  { %p3392_p12 = por %p3391_p11, %p3390_p10 }
  0x77   :  { %p3393_p13 = pnand %p3392_p12, %p3386_p9 }
  0x79   :  { %3396 = shalt.err (!%p3393_p13)
}
  0x7a   :  { %105 = dma.hbm_to_vmem [thread:$0]  %s4078_s8, 16, %s103_s17, [#allocation12]  }
  0x7b   :  { %s3464_s24 = smov [#allocation14]   ;;  %s3397_s2 = scalar_lea.hbm %s4080_s10, 16 }
  0x7c   :  { %s114_s29 = sshll.u32 %s3464_s24, 4  ;;  %p3398_p0 = scmp.ne.s32.totalorder %s4080_s10, %s3397_s2  ;;  %s115_s29 = int_to_ptr.vmem [resolvable:$true] %s114_s29 }
  0x7d   :  { %p3401_p1 = scmp.lt.u32.totalorder %s3397_s2, %s4080_s10 }
  0x7f   :  { %p3403_p2 = pnand %p3401_p1, %p3398_p0 }
  0x81   :  { %3406 = shalt.err (!%p3403_p2)
}
  0x82   :  { %s3407_s25 = scalar_lea.vmem %s115_s29, 16  ;;  %s3411_s8 = scalar_lea.vmem %s115_s29, 32 }
  0x83   :  { %p3408_p3 = scmp.ne.s32.totalorder %s115_s29, %s3407_s25  ;;  %p3412_p4 = scmp.lt.s32.totalorder %s115_s29, %s115_s29 }
  0x84   :  { %p3413_p5 = scmp.lt.s32.totalorder %s3411_s8, %s3407_s25 }
  0x86   :  { %p3414_p6 = por %p3413_p5, %p3412_p4 }
  0x88   :  { %p3415_p7 = pnand %p3414_p6, %p3408_p3 }
  0x8a   :  { %3418 = shalt.err (!%p3415_p7)
}
  0x8b   :  { %117 = dma.hbm_to_vmem [thread:$0]  %s4080_s10, 16, %s115_s29, [#allocation15]  }
  0x8c   :  { %3441 = dma.done.wait [#allocation3], 384  }
  0x8d   :  { %3442 = vsyncadd [#allocation3], 4294966912 }
  0x8e   :  { %3443 = dma.done.wait [#allocation6], 208  }
  0x8f   :  { %3444 = vsyncadd [#allocation6], 4294967088 }
  0x90   :  { %3445 = dma.done.wait [#allocation9], 400  }
  0x91   :  { %3446 = vsyncadd [#allocation9], 4294966896 }
  0x92   :  { %3447 = dma.done.wait [#allocation12], 32  }
  0x93   :  { %3448 = vsyncadd [#allocation12], 4294967264 }
  0x94   :  { %3449 = dma.done.wait [#allocation15], 16  }
  0x95   :  { %3450 = vsyncadd [#allocation15], 4294967280  ;;  %vm196_vm0 = vcmask 1045504   ;;  %v150_v0 = vld [vmem:[#allocation2] sm:$0x3f]  ;;  %v146_v1 = vld [vmem:[%s4070_s0] sm:$0xff]  ;;  %v514_v41 = vlaneseq }
  0x96   :  { %vm157_vm1 = vcmask 1040384   ;;  %v152_v2 = vld [vmem:[#allocation2 + $0x10] sm:$0x3f]  ;;  %3067 = vmatprep.subr.msk.mxu0 %vm196_vm0, %v150_v0  ;;  %v158_v3 = vrot.slane %v146_v1, 7  ;;  %vm187_vm2 = vcmask 48128   ;;  %v148_v5 = vld [vmem:[%s4070_s0 + $0x10] sm:$0xff] }
  0x97   :  { %v147_v4 = vld [vmem:[%s4070_s0 + $0x8] sm:$0xff]  ;;  %v149_v6 = vld [vmem:[%s4070_s0 + $0x18] sm:$0xff]  ;;  %3068 = vmatpush3.msk.msra.mxu0 %vm196_vm0, %v150_v0  ;;  %v161_v8 = vrot.slane %v148_v5, 7  ;;  %v151_v10 = vld [vmem:[#allocation2 + $0x8] sm:$0x3f]  ;;  %vm176_vm3 = vcmask 1046528  }
  0x98   :  { %v159_v7 = vrot.slane %v147_v4, 7  ;;  %v162_v9 = vrot.slane %v149_v6, 7  ;;  %v168_v11 = vsel %vm157_vm1, 0.0, %v158_v3  ;;  %3075 = vmatprep.subr.msk.mxu0 %vm196_vm0, %v152_v2  ;;  %3059 = vmatprep.subr.msk.mxu1 %vm196_vm0, %v151_v10  ;;  %v659_v37 = vld [vmem:[#allocation7 + $0x4] sm:$0xf]  ;;  %vm782_vm4 = vcmask 1043456  }
  0x99   :  { %v177_v12 = vrot.slane %v168_v11, 1  ;;  %3069 = vmatprep.mubr.msk.f32.mxu0 %vm187_vm2, %v168_v11  ;;  %v381_v13 = vrot.slane %v168_v11, 2  ;;  %v169_v15 = vsel %vm157_vm1, 0.0, %v161_v8  ;;  %3060 = vmatpush3.msk.msra.mxu1 %vm196_vm0, %v151_v10  ;;  %v3703_v38 = vld [vmem:[#allocation7] sm:$0xf]  ;;  %v3708_v45 = vshrl.u32 %v514_v41, 7 }
  0x9a   :  { %v160_v14 = vsel %vm157_vm1, %v158_v3, %v159_v7  ;;  %v182_v17 = vrot.slane %v169_v15, 1  ;;  %v386_v18 = vrot.slane %v169_v15, 2  ;;  %v163_v19 = vsel %vm157_vm1, %v161_v8, %v162_v9  ;;  %3083 = vmatprep.subr.msk.mxu1 %vm782_vm4, %v659_v37  ;;  %v2908_v47 = vld [vmem:[#allocation5] ss:$0 sm:$0xff] }
  0x9b   :  { %3070 = vmatmul.mubr.msk.f32.vlgmr.msra.gmra.mrb[0].mxu0 %vm187_vm2, %v160_v14  ;;  %v382_v16 = vrot.slane %v160_v14, 2  ;;  %v183_v20 = vrot.slane %v163_v19, 1  ;;  %v387_v21 = vrot.slane %v163_v19, 2  ;;  %v178_v22 = vrot.slane %v160_v14, 1 }
  0x9c   :  { %3076 = vmatpush3.msk.msra.mxu0 %vm196_vm0, %v152_v2  ;;  %3072 = vmatprep.mubr.msk.f32.mxu0 %vm187_vm2, %v169_v15  ;;  %v170_v23 = vsel %vm157_vm1, %v159_v7, 0.0  ;;  %v171_v27 = vsel %vm157_vm1, %v162_v9, 0.0  ;;  %v3465_v39 = vmov 1983009808   ;;  %vm741_vm5 = vcmask 1042434  }
  0x9d   :  { %v180_v24 = vrot.slane %v170_v23, 1  ;;  %v384_v25 = vrot.slane %v170_v23, 2  ;;  %v383_v26 = vsel %vm196_vm0, %v381_v13, %v382_v16  ;;  %v179_v28 = vsel %vm176_vm3, %v177_v12, %v178_v22 }
  0x9e   :  { %v184_v29 = vsel %vm176_vm3, %v182_v17, %v183_v20  ;;  %v185_v30 = vrot.slane %v171_v27, 1  ;;  %3061 = vmatprep.mubr.msk.f32.mxu1 %vm187_vm2, %v179_v28  ;;  %v389_v33 = vrot.slane %v171_v27, 2  ;;  %v388_v35 = vsel %vm196_vm0, %v386_v18, %v387_v21 }
  0x9f   :  { %3073 = vmatmul.mubr.msk.f32.gmra.mrb[2].mxu0 %vm187_vm2, %v163_v19  ;;  %v181_v31 = vsel %vm176_vm3, %v178_v22, %v180_v24  ;;  %v385_v32 = vsel %vm196_vm0, %v382_v16, %v384_v25  ;;  %v512_v40 = vunpack.c.l.s4 %v3465_v39  ;;  %v3730_v12 = vsub.s32 0, %v3708_v45 }
  0xa0   :  { %3062 = vmatmul.mubr.msk.f32.vlgmr.msra.gmra.mrb[0].mxu1 %vm187_vm2, %v181_v31  ;;  %3077 = vmatprep.mubr.msk.f32.mxu0 %vm187_vm2, %v383_v26  ;;  %v186_v34 = vsel %vm176_vm3, %v183_v20, %v185_v30  ;;  %v390_v36 = vsel %vm196_vm0, %v387_v21, %v389_v33  ;;  %vm743_vm6 = vcmask 1043459   ;;  %vm745_vm7 = vcmask 1044484  }
  0xa1   :  { %3064 = vmatprep.mubr.msk.f32.mxu1 %vm187_vm2, %v184_v29  ;;  %3084 = vmatpush3.msk.msra.mxu1 %vm782_vm4, %v659_v37  ;;  %v513_v44 = vunpack.c.0.s8 %v512_v40  ;;  %vm747_vm8 = vcmask 1045509   ;;  %vm749_vm9 = vcmask 1046534   ;;  %vm751_vm10 = vcmask 1047559  }
  0xa2   :  { %3088 = vmatprep.subr.msk.mxu1 %vm782_vm4, %v3703_v38  ;;  %vm777_vm11 = vcmask 31744   ;;  %vm3467_vm12 = vmmov 0   ;;  %vm1173_vm13 = vcmask 1044480   ;;  %vm1180_vm14 = vcmask 1042432  }
  0xa3   :  { %3078 = vmatmul.mubr.msk.f32.vlgmr.msra.gmra.mrb[0].mxu0 %vm187_vm2, %v385_v32  ;;  %v3711_v54 = vsub.s32 %v513_v44, %v3708_v45  ;;  %vm1181_vm15 = vcmask 1046532  }
  0xa4   :  { %3065 = vmatmul.mubr.msk.f32.gmra.mrb[2].mxu1 %vm187_vm2, %v186_v34  ;;  %3080 = vmatprep.mubr.msk.f32.mxu0 %vm187_vm2, %v388_v35 }
  0xa7   :  { %3081 = vmatmul.mubr.msk.f32.gmra.mrb[2].mxu0 %vm187_vm2, %v390_v36 }
 0x173   :  { %v3063_v42 = vpop.f32.mrb[0].mxu1 }
 0x174   :  { %v266_v43 = vpop.f32.mrb[1].mxu1 }
 0x176   :  { %v3079_v46 = vpop.f32.mrb[0].mxu0 }
 0x177   :  { %v3194_v48 = vadd.f32 %v3079_v46, %v3063_v42  ;;  %v468_v49 = vpop.f32.mrb[1].mxu0  ;;  %v3066_v50 = vpop.f32.mrb[2].mxu1 }
 0x178   :  { %v3195_v51 = vadd.f32 %v468_v49, %v266_v43  ;;  %v276_v52 = vpop.f32.mrb[3].mxu1 }
 0x179   :  { %v499_v53 = vadd.f32 %v3194_v48, %v2908_v47 }
 0x17a   :  { %v498_v55 = vadd.f32 %v3195_v51, %v2908_v47  ;;  %v3082_v56 = vpop.f32.mrb[2].mxu0 }
 0x17b   :  { %v3713_v57 = vmax.f32 %v499_v53, 0.0  ;;  %v3196_v58 = vadd.f32 %v3082_v56, %v3066_v50  ;;  %v478_v59 = vpop.f32.mrb[3].mxu0 }
 0x17c   :  { %v3715_v60 = vmax.f32 %v498_v55, 0.0  ;;  %v3197_v61 = vadd.f32 %v478_v59, %v276_v52 }
 0x17d   :  { %v527_v62 = vcombine.high %v3713_v57, %v3713_v57  ;;  %v534_v63 = vrot.slane %v3713_v57, %v3711_v54  ;;  %v501_v0 = vadd.f32 %v3196_v58, %v2908_v47 }
 0x17e   :  { %v510_v1 = vcombine.high %v3715_v60, %v3715_v60  ;;  %v517_v2 = vrot.slane %v3715_v60, %v3711_v54  ;;  %v500_v3 = vadd.f32 %v3197_v61, %v2908_v47 }
 0x17f   :  { %v541_v4 = vrot.slane %v527_v62, %v3711_v54  ;;  %v542_v5 = vcombine.high %v534_v63, %v534_v63  ;;  %v3726_v6 = vmax.f32 %v501_v0, 0.0  ;;  %v2913_v7 = vrot.slane %v534_v63, 9 }
 0x180   :  { %v524_v8 = vrot.slane %v510_v1, %v3711_v54  ;;  %v525_v9 = vcombine.high %v517_v2, %v517_v2  ;;  %v2909_v10 = vrot.slane %v517_v2, 9  ;;  %v3732_v13 = vmax.f32 %v500_v3, 0.0 }
 0x181   :  { %v2914_v11 = vrot.slane %v542_v5, 9  ;;  %v2915_v14 = vrot.slane %v541_v4, 9  ;;  %v561_v19 = vcombine.high %v3726_v6, %v3726_v6  ;;  %v646_v20 = vmax.f32 %v534_v63, %v2913_v7 }
 0x182   :  { %v526_v15 = vcombine.high %v524_v8, %v524_v8  ;;  %v2910_v16 = vrot.slane %v525_v9, 9  ;;  %v2911_v17 = vrot.slane %v524_v8, 9  ;;  %v642_v18 = vmax.f32 %v517_v2, %v2909_v10 }
 0x183   :  { %v543_v24 = vcombine.high %v541_v4, %v541_v4  ;;  %v568_v25 = vrot.slane %v3726_v6, %v3711_v54  ;;  %v575_v26 = vrot.slane %v561_v19, %v3711_v54  ;;  %v544_v27 = vcombine.high %v3732_v13, %v3732_v13 }
 0x184   :  { %v2912_v21 = vrot.slane %v526_v15, 9  ;;  %v643_v22 = vmax.f32 %v525_v9, %v2910_v16  ;;  %v644_v23 = vmax.f32 %v524_v8, %v2911_v17  ;;  %v647_v28 = vmax.f32 %v542_v5, %v2914_v11 }
 0x185   :  { %v648_v29 = vmax.f32 %v541_v4, %v2915_v14  ;;  %v551_v31 = vrot.slane %v3732_v13, %v3711_v54  ;;  %v680_v33 = vrot.slane %v642_v18, %v3730_v12  ;;  %v576_v34 = vcombine.high %v568_v25, %v568_v25 }
 0x186   :  { %v684_v30 = vrot.slane %v643_v22, %v3730_v12  ;;  %v645_v32 = vmax.f32 %v526_v15, %v2912_v21  ;;  %v577_v35 = vcombine.high %v575_v26, %v575_v26  ;;  %v696_v36 = vrot.slane %v646_v20, %v3730_v12 }
 0x187   :  { %v688_v37 = vrot.slane %v644_v23, %v3730_v12  ;;  %v558_v39 = vrot.slane %v544_v27, %v3711_v54  ;;  %v559_v40 = vcombine.high %v551_v31, %v551_v31  ;;  %v2921_v43 = vrot.slane %v568_v25, 9 }
 0x188   :  { %v742_v42 = vsel %vm741_vm5, %v684_v30, %v680_v33  ;;  %v2922_v44 = vrot.slane %v576_v34, 9  ;;  %v2924_v46 = vrot.slane %v577_v35, 9  ;;  %v2917_v48 = vrot.slane %v551_v31, 9 }
 0x189   :  { %v560_v47 = vcombine.high %v558_v39, %v558_v39  ;;  %v2918_v49 = vrot.slane %v559_v40, 9  ;;  %v2919_v50 = vrot.slane %v558_v39, 9  ;;  %v700_v51 = vrot.slane %v647_v28, %v3730_v12 }
 0x18a   :  { %v692_v52 = vrot.slane %v645_v32, %v3730_v12  ;;  %v2923_v53 = vrot.slane %v575_v26, 9  ;;  %v657_v55 = vmax.f32 %v577_v35, %v2924_v46  ;;  %v650_v58 = vmax.f32 %v551_v31, %v2917_v48 }
 0x18b   :  { %v2920_v56 = vrot.slane %v560_v47, 9  ;;  %v651_v59 = vmax.f32 %v559_v40, %v2918_v49  ;;  %v652_v61 = vmax.f32 %v558_v39, %v2919_v50  ;;  %v654_v62 = vmax.f32 %v568_v25, %v2921_v43  ;;  %v660_v39 = vld [vmem:[#allocation7 + $0x8] sm:$0xf]  ;;  %v2934_v49 = vld [vmem:[#allocation8] ss:$0 sm:$0xff] }
 0x18c   :  { %v655_v63 = vmax.f32 %v576_v34, %v2922_v44  ;;  %v2916_v0 = vrot.slane %v543_v24, 9  ;;  %v744_v1 = vsel %vm743_vm6, %v688_v37, %v742_v42  ;;  %v712_v3 = vrot.slane %v650_v58, %v3730_v12 }
 0x18d   :  { %v653_v2 = vmax.f32 %v560_v47, %v2920_v56  ;;  %v716_v4 = vrot.slane %v651_v59, %v3730_v12  ;;  %v720_v5 = vrot.slane %v652_v61, %v3730_v12  ;;  %v656_v7 = vmax.f32 %v575_v26, %v2923_v53 }
 0x18e   :  { %v649_v8 = vmax.f32 %v543_v24, %v2916_v0  ;;  %v704_v9 = vrot.slane %v648_v29, %v3730_v12  ;;  %v746_v10 = vsel %vm745_vm7, %v692_v52, %v744_v1  ;;  %v740_v16 = vrot.slane %v657_v55, %v3730_v12 }
 0x18f   :  { %v724_v11 = vrot.slane %v653_v2, %v3730_v12  ;;  %v753_v14 = vsel %vm741_vm5, %v716_v4, %v712_v3  ;;  %v748_v15 = vsel %vm747_vm8, %v696_v36, %v746_v10  ;;  %v728_v17 = vrot.slane %v654_v62, %v3730_v12 }
 0x190   :  { %v754_v18 = vsel %vm743_vm6, %v720_v5, %v753_v14  ;;  %v708_v19 = vrot.slane %v649_v8, %v3730_v12  ;;  %v750_v20 = vsel %vm749_vm9, %v700_v51, %v748_v15  ;;  %v732_v21 = vrot.slane %v655_v63, %v3730_v12 }
 0x191   :  { %v752_v22 = vsel %vm751_vm10, %v704_v9, %v750_v20  ;;  %v755_v23 = vsel %vm745_vm7, %v724_v11, %v754_v18  ;;  %v736_v24 = vrot.slane %v656_v7, %v3730_v12  ;;  %v766_v31 = vsel %vm157_vm1, %v740_v16, 0.0 }
 0x192   :  { %v756_v25 = vsel %vm747_vm8, %v728_v17, %v755_v23  ;;  %v763_v26 = vsel %vm157_vm1, 0.0, %v752_v22  ;;  %v765_v27 = vsel %vm157_vm1, %v708_v19, 0.0  ;;  %v775_v36 = vrot.slane %v766_v31, 1  ;;  %vm1182_vm8 = vmor %vm1180_vm14, %vm1181_vm15 }
 0x193   :  { %v757_v28 = vsel %vm749_vm9, %v732_v21, %v756_v25  ;;  %v771_v29 = vrot.slane %v763_v26, 1  ;;  %v772_v30 = vrot.slane %v765_v27, 1  ;;  %v943_v40 = vrot.slane %v763_v26, 2 }
 0x194   :  { %v758_v32 = vsel %vm751_vm10, %v736_v24, %v757_v28  ;;  %v944_v42 = vrot.slane %v765_v27, 2  ;;  %v947_v46 = vrot.slane %v766_v31, 2  ;;  %v3466_v48 = vmov 0.0  }
 0x195   :  { %v773_v33 = vsel %vm176_vm3, %v771_v29, %v772_v30  ;;  %v764_v34 = vsel %vm157_vm1, 0.0, %v758_v32  ;;  %vm1339_vm9 = vcmask 1045508   ;;  %vm1436_vm10 = vcmask 125952  }
 0x196   :  { %3085 = vmatprep.mubr.msk.f32.mxu1 %vm777_vm11, %v773_v33  ;;  %v774_v35 = vrot.slane %v764_v34, 1  ;;  %v945_v43 = vsel %vm196_vm0, %v943_v40, %v944_v42  ;;  %v946_v44 = vrot.slane %v764_v34, 2 }
 0x198   :  { %v776_v37 = vsel %vm176_vm3, %v774_v35, %v775_v36  ;;  %v948_v47 = vsel %vm196_vm0, %v946_v44, %v947_v46 }
 0x199   :  { %3086 = vmatmul.mubr.msk.f32.vlgmr.msra.gmra.mrb[4].mxu1 %vm777_vm11, %v776_v37 }
 0x19a   :  { %3089 = vmatpush3.msk.msra.mxu1 %vm782_vm4, %v3703_v38  ;;  %3090 = vmatprep.mubr.msk.f32.mxu1 %vm777_vm11, %v763_v26  ;;  %v1121_v38 = vld [vmem:[#allocation10 + $0x8] sm:$0xff] }
 0x19b   :  { %3093 = vmatprep.subr.msk.mxu1 %vm782_vm4, %v660_v39 }
 0x1a1   :  { %3091 = vmatmul.mubr.msk.f32.vlgmr.msra.gmra.mrb[4].mxu1 %vm777_vm11, %v764_v34 }
 0x1a2   :  { %3094 = vmatpush3.msk.msra.mxu1 %vm782_vm4, %v660_v39  ;;  %3095 = vmatprep.mubr.msk.f32.mxu1 %vm777_vm11, %v945_v43 }
 0x1a3   :  { %3098 = vmatprep.subr.mxu1 %v3466_v48 }
 0x1a9   :  { %3096 = vmatmul.mubr.msk.f32.vlgmr.msra.gmra.mrb[4].mxu1 %vm777_vm11, %v948_v47 }
 0x1aa   :  { %3100 = vmatprep.mubr.msk.f32.mxu1 %vm3467_vm12, %v3466_v48  ;;  %3099 = vmatpush3.msra.mxu1 %v1121_v38 }
 0x1ab   :  { %3103 = vmatprep.subr.mxu1 %v3466_v48 }
 0x27c   :  { %v3097_v50 = vpop.f32.mrb[4].mxu1 }
 0x27d   :  { %v1041_v51 = vadd.f32 %v3097_v50, %v2934_v49  ;;  %v1022_v52 = vpop.f32.mrb[5].mxu1 }
 0x27e   :  { %v1040_v53 = vadd.f32 %v2934_v49, %v1022_v52 }
 0x27f   :  { %v3794_v55 = vmax.f32 %v1041_v51, 0.0 }
 0x280   :  { %v3796_v56 = vmax.f32 %v1040_v53, 0.0 }
 0x281   :  { %v1063_v58 = vcombine.high %v3794_v55, %v3794_v55  ;;  %v1070_v59 = vrot.slane %v3794_v55, %v3711_v54 }
 0x282   :  { %v1046_v61 = vcombine.high %v3796_v56, %v3796_v56  ;;  %v1053_v62 = vrot.slane %v3796_v56, %v3711_v54 }
 0x283   :  { %v1077_v63 = vrot.slane %v1063_v58, %v3711_v54  ;;  %v1078_v0 = vcombine.high %v1070_v59, %v1070_v59  ;;  %v2939_v1 = vrot.slane %v1070_v59, 9  ;;  %v1120_v58 = vld [vmem:[#allocation10] sm:$0xff] }
 0x284   :  { %v1060_v2 = vrot.slane %v1046_v61, %v3711_v54  ;;  %v1061_v3 = vcombine.high %v1053_v62, %v1053_v62  ;;  %v2935_v4 = vrot.slane %v1053_v62, 9 }
 0x285   :  { %v1079_v5 = vcombine.high %v1077_v63, %v1077_v63  ;;  %v2940_v7 = vrot.slane %v1078_v0, 9  ;;  %v2941_v8 = vrot.slane %v1077_v63, 9  ;;  %v1116_v9 = vmax.f32 %v1070_v59, %v2939_v1  ;;  %v1122_v1 = vld [vmem:[#allocation10 + $0x10] sm:$0xff] }
 0x286   :  { %v1062_v10 = vcombine.high %v1060_v2, %v1060_v2  ;;  %v2936_v11 = vrot.slane %v1061_v3, 9  ;;  %v2937_v14 = vrot.slane %v1060_v2, 9  ;;  %v1112_v15 = vmax.f32 %v1053_v62, %v2935_v4 }
 0x287   :  { %v2942_v16 = vrot.slane %v1079_v5, 9  ;;  %v1117_v17 = vmax.f32 %v1078_v0, %v2940_v7  ;;  %v1118_v18 = vmax.f32 %v1077_v63, %v2941_v8  ;;  %v1150_v23 = vrot.slane %v1116_v9, %v3730_v12  ;;  %v1548_v7 = vld [vmem:[%s4077_s7 + $0x18] sm:$0xff]  ;;  %v1545_v9 = vld [vmem:[%s4077_s7] sm:$0xff] }
 0x288   :  { %v2938_v19 = vrot.slane %v1062_v10, 9  ;;  %v1113_v20 = vmax.f32 %v1061_v3, %v2936_v11  ;;  %v1114_v21 = vmax.f32 %v1060_v2, %v2937_v14  ;;  %v1134_v27 = vrot.slane %v1112_v15, %v3730_v12 }
 0x289   :  { %v1119_v22 = vmax.f32 %v1079_v5, %v2942_v16  ;;  %v1154_v24 = vrot.slane %v1117_v17, %v3730_v12  ;;  %v1158_v25 = vrot.slane %v1118_v18, %v3730_v12  ;;  %v1547_v5 = vld [vmem:[%s4077_s7 + $0x10] sm:$0xff]  ;;  %v3468_v15 = vmov 1966171168  }
 0x28a   :  { %v1115_v26 = vmax.f32 %v1062_v10, %v2938_v19  ;;  %v1138_v28 = vrot.slane %v1113_v20, %v3730_v12  ;;  %v1142_v29 = vrot.slane %v1114_v21, %v3730_v12  ;;  %v3182_v8 = vpack.c.bf16 %v1548_v7, %v1547_v5 }
 0x28b   :  { %v1162_v30 = vrot.slane %v1119_v22, %v3730_v12  ;;  %v1166_v31 = vsel %vm741_vm5, %v1154_v24, %v1150_v23  ;;  %v1442_v16 = vunpack.c.l.s4 %v3468_v15  ;;  %v2950_v22 = vld [vmem:[#allocation11] ss:$0 sm:$0xff] }
 0x28c   :  { %v1167_v32 = vsel %vm743_vm6, %v1158_v25, %v1166_v31  ;;  %v1146_v33 = vrot.slane %v1115_v26, %v3730_v12  ;;  %v1163_v34 = vsel %vm741_vm5, %v1138_v28, %v1134_v27  ;;  %vm1192_vm5 = vcmask 64512   ;;  %3183 = vmatprep.subr.bf16.mxu0 %v3182_v8 }
 0x28d   :  { %v1168_v35 = vsel %vm745_vm7, %v1162_v30, %v1167_v32  ;;  %v1164_v36 = vsel %vm743_vm6, %v1142_v29, %v1163_v34  ;;  %vm1338_vm6 = vcmask 1041408   ;;  %3185 = vmatpush3.bf16.msra.mxu0 %v3182_v8  ;;  %v1443_v20 = vunpack.c.0.s8 %v1442_v16 }
 0x28e   :  { %v1172_v37 = vsel %vm157_vm1, 0.0, %v1168_v35  ;;  %v1165_v39 = vsel %vm745_vm7, %v1146_v33, %v1164_v36  ;;  %vm1340_vm7 = vmor %vm1338_vm6, %vm1339_vm9 }
 0x28f   :  { %v1171_v40 = vsel %vm157_vm1, 0.0, %v1165_v39  ;;  %v1175_v42 = vsel %vm1173_vm13, %v1172_v37, 0.0  ;;  %v3848_v26 = vsub.s32 %v1443_v20, %v3708_v45 }
 0x290   :  { %v1174_v43 = vsel %vm1173_vm13, %v1171_v40, 0.0  ;;  %v1179_v44 = vcombine.high %v1175_v42, %v1175_v42  ;;  %v2944_v47 = vrot.slane %v1175_v42, 9  ;;  %v2948_v63 = vrot.slane %v1175_v42, 10 }
 0x291   :  { %v1178_v46 = vcombine.high %v1174_v43, %v1174_v43  ;;  %v2943_v49 = vrot.slane %v1174_v43, 9  ;;  %v2947_v62 = vrot.slane %v1174_v43, 10  ;;  %v1265_v0 = vcombine.low %v1174_v43, %v1175_v42 }
 0x292   :  { %v1189_v38 = vrot.slane %v1179_v44, 5  ;;  %v1347_v61 = vrot.slane %v1179_v44, 6 }
 0x293   :  { %v1185_v50 = vrot.slane %v1178_v46, 5  ;;  %v1343_v59 = vrot.slane %v1178_v46, 6 }
 0x294   :  { %v1190_v51 = vsel %vm1182_vm8, %v2944_v47, %v1189_v38  ;;  %v1348_v3 = vsel %vm1340_vm7, %v2948_v63, %v1347_v61 }
 0x295   :  { %v1186_v52 = vsel %vm1182_vm8, %v2943_v49, %v1185_v50  ;;  %v1344_v2 = vsel %vm1340_vm7, %v2947_v62, %v1343_v59 }
 0x296   :  { %v1191_v53 = vcombine.low %v1186_v52, %v1190_v51  ;;  %v1349_v4 = vcombine.low %v1344_v2, %v1348_v3 }
 0x298   :  { %3101 = vmatmul.mubr.msk.f32.vlgmr.msra.gmra.mrb[6].mxu1 %vm1192_vm5, %v1191_v53 }
 0x299   :  { %3104 = vmatpush3.msra.mxu1 %v1120_v58  ;;  %3105 = vmatprep.mubr.msk.f32.mxu1 %vm3467_vm12, %v3466_v48 }
 0x29a   :  { %3108 = vmatprep.subr.mxu1 %v3466_v48 }
 0x29c   :  { %3106 = vmatmul.mubr.msk.f32.vlgmr.msra.gmra.mrb[8].mxu1 %vm1192_vm5, %v1265_v0 }
 0x29d   :  { %3109 = vmatpush3.msra.mxu1 %v1122_v1  ;;  %3110 = vmatprep.mubr.msk.f32.mxu1 %vm3467_vm12, %v3466_v48  ;;  %v1546_v48 = vld [vmem:[%s4077_s7 + $0x8] sm:$0xff]  ;;  %vm1611_vm12 = vcmask 130048  }
 0x29e   :  { %v3844_v10 = vpack.c.bf16 %v1546_v48, %v1545_v9 }
 0x2a0   :  { %3111 = vmatmul.mubr.msk.f32.vlgmr.msra.gmra.mrb[10].mxu1 %vm1192_vm5, %v1349_v4  ;;  %3187 = vmatprep.subr.bf16.mxu0 %v3844_v10 }
 0x36b   :  { %v1261_v11 = vpop.f32.mrb[6].mxu1 }
 0x36c   :  { %v3102_v14 = vpop.f32.mrb[7].mxu1 }
 0x36f   :  { %v1334_v17 = vpop.f32.mrb[8].mxu1 }
 0x370   :  { %v1335_v18 = vadd.f32 %v1334_v17, %v1261_v11  ;;  %v3107_v19 = vpop.f32.mrb[9].mxu1 }
 0x371   :  { %v1550_v19 = vld [vmem:[%s4077_s7 + $0x28] sm:$0xff] }
 0x373   :  { %v1418_v21 = vpop.f32.mrb[10].mxu1 }
 0x374   :  { %v1422_v23 = vadd.f32 %v1418_v21, %v1335_v18  ;;  %v3112_v24 = vpop.f32.mrb[11].mxu1  ;;  %v1549_v18 = vld [vmem:[%s4077_s7 + $0x20] sm:$0xff] }
 0x376   :  { %v1430_v25 = vadd.f32 %v2950_v22, %v1422_v23 }
 0x378   :  { %v1432_v27 = vcombine.high %v1430_v25, %v1430_v25  ;;  %v1434_v28 = vmax.f32 %v1430_v25, 0.0 }
 0x37a   :  { %v1435_v29 = vmax.f32 %v1432_v27, 0.0  ;;  %v1447_v30 = vrot.slane %v1434_v28, %v3848_v26  ;;  %1437 = vst.msk [vmem:[#allocation16] sm:$0xf] %vm1436_vm10, %v1434_v28  ;;  %v3190_v28 = vpack.c.bf16 %v1550_v19, %v1549_v18 }
 0x37c   :  { %v1448_v31 = vcombine.high %v1447_v30, %v1447_v30  ;;  %v1455_v32 = vrot.slane %v1447_v30, %v3848_v26  ;;  %v1471_v33 = vrot.slane %v1435_v29, %v3848_v26  ;;  %1438 = vst.msk [vmem:[#allocation16 + $0x4] sm:$0xf] %vm1436_vm10, %v1435_v29 }
 0x37e   :  { %v1462_v34 = vrot.slane %v1448_v31, %v3848_v26  ;;  %v1463_v35 = vcombine.high %v1455_v32, %v1455_v32  ;;  %v1472_v36 = vcombine.high %v1471_v33, %v1471_v33  ;;  %v1479_v45 = vrot.slane %v1471_v33, %v3848_v26 }
 0x37f   :  { %v1500_v37 = vrot.slane %v1455_v32, %v3730_v12 }
 0x380   :  { %v1464_v39 = vcombine.high %v1462_v34, %v1462_v34  ;;  %v1486_v40 = vrot.slane %v1472_v36, %v3848_v26  ;;  %v1487_v42 = vcombine.high %v1479_v45, %v1479_v45  ;;  %v1504_v43 = vrot.slane %v1462_v34, %v3730_v12  ;;  %v3903_v36 = vld [vmem:[%s4079_s9] sm:$0xff] }
 0x381   :  { %v1508_v44 = vrot.slane %v1463_v35, %v3730_v12  ;;  %v1516_v46 = vrot.slane %v1479_v45, %v3730_v12  ;;  %v1537_v51 = vsel %vm157_vm1, %v1455_v32, %v1500_v37 }
 0x382   :  { %v1488_v47 = vcombine.high %v1486_v40, %v1486_v40  ;;  %v1512_v38 = vrot.slane %v1464_v39, %v3730_v12  ;;  %v1520_v49 = vrot.slane %v1486_v40, %v3730_v12  ;;  %v1524_v50 = vrot.slane %v1487_v42, %v3730_v12 }
 0x383   :  { %v1538_v52 = vsel %vm157_vm1, %v1462_v34, %v1504_v43  ;;  %v1541_v58 = vsel %vm157_vm1, %v1479_v45, %v1516_v46  ;;  %v1539_v63 = vsel %vm157_vm1, %v1463_v35, %v1508_v44  ;;  %v2957_v45 = vld [vmem:[#allocation13] ss:$0 sm:$0xff] }
 0x384   :  { %v1528_v53 = vrot.slane %v1488_v47, %v3730_v12  ;;  %v1542_v59 = vsel %vm157_vm1, %v1486_v40, %v1520_v49  ;;  %v1559_v61 = vcombine.low %v1537_v51, %v1538_v52  ;;  %v1540_v0 = vsel %vm157_vm1, %v1464_v39, %v1512_v38 }
 0x385   :  { %v1576_v62 = vcombine.low %v1541_v58, %v1542_v59  ;;  %v1543_v1 = vsel %vm157_vm1, %v1487_v42, %v1524_v50  ;;  %v1560_v3 = vcombine.low %v1539_v63, %v1540_v0 }
 0x386   :  { %v1544_v2 = vsel %vm157_vm1, %v1488_v47, %v1528_v53  ;;  %v1567_v5 = vrot.slane %v1559_v61, %v3711_v54 }
 0x387   :  { %v1577_v4 = vcombine.low %v1543_v1, %v1544_v2  ;;  %v1574_v7 = vrot.slane %v1560_v3, %v3711_v54  ;;  %v1584_v8 = vrot.slane %v1576_v62, %v3711_v54 }
 0x389   :  { %v1591_v9 = vrot.slane %v1577_v4, %v3711_v54  ;;  %v1575_v48 = vcombine.low %v1567_v5, %v1574_v7 }
 0x38b   :  { %v1592_v11 = vcombine.low %v1584_v8, %v1591_v9  ;;  %v1593_v14 = vrot.slane %v1575_v48, 7 }
 0x38d   :  { %v1594_v15 = vrot.slane %v1592_v11, 7  ;;  %v1597_v16 = vsel %vm157_vm1, 0.0, %v1593_v14  ;;  %v1599_v17 = vsel %vm157_vm1, %v1593_v14, 0.0 }
 0x38e   :  { %v1605_v20 = vrot.slane %v1597_v16, 1  ;;  %v1606_v21 = vrot.slane %v1599_v17, 1  ;;  %v1770_v30 = vrot.slane %v1597_v16, 2  ;;  %v1771_v31 = vrot.slane %v1599_v17, 2 }
 0x38f   :  { %v1598_v22 = vsel %vm157_vm1, 0.0, %v1594_v15  ;;  %v1600_v23 = vsel %vm157_vm1, %v1594_v15, 0.0 }
 0x390   :  { %v1608_v24 = vrot.slane %v1598_v22, 1  ;;  %v1609_v25 = vrot.slane %v1600_v23, 1  ;;  %v1607_v27 = vsel %vm176_vm3, %v1605_v20, %v1606_v21  ;;  %v1772_v32 = vsel %vm196_vm0, %v1770_v30, %v1771_v31 }
 0x391   :  { %3117 = vmatprep.mubr.msk.f32.mxu0 %vm1611_vm12, %v1607_v27  ;;  %v1773_v33 = vrot.slane %v1598_v22, 2  ;;  %v1774_v34 = vrot.slane %v1600_v23, 2 }
 0x392   :  { %v1610_v29 = vsel %vm176_vm3, %v1608_v24, %v1609_v25 }
 0x393   :  { %3118 = vmatmul.mubr.msk.f32.vlgmr.msra.gmra.mrb[4].mxu0 %vm1611_vm12, %v1610_v29  ;;  %v1775_v35 = vsel %vm196_vm0, %v1773_v33, %v1774_v34 }
 0x394   :  { %3189 = vmatpush3.bf16.msra.mxu0 %v3844_v10  ;;  %3124 = vmatprep.mubr.msk.f32.mxu0 %vm1611_vm12, %v1597_v16  ;;  %v2083_v10 = vld [vmem:[%s4079_s9 + $0x8] sm:$0xff] }
 0x395   :  { %3191 = vmatprep.subr.bf16.mxu0 %v3190_v28  ;;  %3134 = vmatprep.subr.mxu1 %v2083_v10 }
 0x396   :  { %3135 = vmatpush3.msra.mxu1 %v2083_v10 }
 0x397   :  { %3142 = vmatprep.subr.mxu1 %v3903_v36 }
 0x39b   :  { %3125 = vmatmul.mubr.msk.f32.vlgmr.msra.gmra.mrb[4].mxu0 %vm1611_vm12, %v1598_v22 }
 0x39c   :  { %3193 = vmatpush3.bf16.msra.mxu0 %v3190_v28  ;;  %3131 = vmatprep.mubr.msk.f32.mxu0 %vm1611_vm12, %v1772_v32 }
 0x3a3   :  { %3132 = vmatmul.mubr.msk.f32.vlgmr.msra.gmra.mrb[4].mxu0 %vm1611_vm12, %v1775_v35 }
 0x476   :  { %v3133_v37 = vpop.f32.mrb[4].mxu0 }
 0x477   :  { %v1865_v39 = vadd.f32 %v3133_v37, %v2957_v45  ;;  %v1846_v40 = vpop.f32.mrb[5].mxu0 }
 0x478   :  { %v1864_v42 = vadd.f32 %v2957_v45, %v1846_v40 }
 0x479   :  { %v1867_v43 = vmax.f32 %v1865_v39, 0.0 }
 0x47a   :  { %v1866_v44 = vmax.f32 %v1864_v42, 0.0 }
 0x47b   :  { %v1869_v46 = vadd.f32 %v1867_v43, %v3794_v55 }
 0x47c   :  { %v1868_v47 = vadd.f32 %v1866_v44, %v3796_v56 }
 0x47d   :  { %v1921_v38 = vcombine.high %v1869_v46, %v1869_v46  ;;  %v1928_v49 = vrot.slane %v1869_v46, %v3848_v26 }
 0x47e   :  { %v1872_v50 = vcombine.high %v1868_v47, %v1868_v47  ;;  %v1879_v51 = vrot.slane %v1868_v47, %v3848_v26 }
 0x47f   :  { %v1935_v52 = vrot.slane %v1921_v38, %v3848_v26  ;;  %v1936_v53 = vcombine.high %v1928_v49, %v1928_v49  ;;  %v1944_v58 = vrot.slane %v1928_v49, %v3848_v26 }
 0x480   :  { %v1886_v59 = vrot.slane %v1872_v50, %v3848_v26  ;;  %v1887_v61 = vcombine.high %v1879_v51, %v1879_v51  ;;  %v1895_v2 = vrot.slane %v1879_v51, %v3848_v26 }
 0x481   :  { %v1937_v62 = vcombine.high %v1935_v52, %v1935_v52  ;;  %v1951_v63 = vrot.slane %v1935_v52, %v3848_v26  ;;  %v1958_v55 = vrot.slane %v1936_v53, %v3848_v26  ;;  %v1966_v56 = vcombine.high %v1944_v58, %v1944_v58 }
 0x482   :  { %v2021_v0 = vrot.slane %v1944_v58, %v3730_v12  ;;  %v1888_v1 = vcombine.high %v1886_v59, %v1886_v59  ;;  %v1902_v3 = vrot.slane %v1886_v59, %v3848_v26  ;;  %v1909_v11 = vrot.slane %v1887_v61, %v3848_v26 }
 0x483   :  { %v1965_v4 = vrot.slane %v1937_v62, %v3848_v26  ;;  %v1967_v5 = vcombine.high %v1951_v63, %v1951_v63  ;;  %v1968_v7 = vcombine.high %v1958_v55, %v1958_v55  ;;  %v2025_v8 = vrot.slane %v1958_v55, %v3730_v12 }
 0x484   :  { %v2029_v9 = vrot.slane %v1966_v56, %v3730_v12  ;;  %v2037_v48 = vrot.slane %v1951_v63, %v3730_v12  ;;  %v1916_v14 = vrot.slane %v1888_v1, %v3848_v26  ;;  %v2074_v19 = vsel %vm157_vm1, %v1944_v58, %v2021_v0 }
 0x485   :  { %v1969_v15 = vcombine.high %v1965_v4, %v1965_v4  ;;  %v2041_v16 = vrot.slane %v1965_v4, %v3730_v12  ;;  %v2045_v17 = vrot.slane %v1967_v5, %v3730_v12  ;;  %v2033_v18 = vrot.slane %v1968_v7, %v3730_v12 }
 0x486   :  { %v1917_v20 = vcombine.high %v1895_v2, %v1895_v2  ;;  %v2075_v22 = vsel %vm157_vm1, %v1958_v55, %v2025_v8  ;;  %v2076_v23 = vsel %vm157_vm1, %v1966_v56, %v2029_v9  ;;  %v2078_v26 = vsel %vm157_vm1, %v1951_v63, %v2037_v48 }
 0x487   :  { %v2049_v21 = vrot.slane %v1969_v15, %v3730_v12  ;;  %v2079_v24 = vsel %vm157_vm1, %v1965_v4, %v2041_v16  ;;  %v1918_v25 = vcombine.high %v1902_v3, %v1902_v3  ;;  %v1919_v27 = vcombine.high %v1909_v11, %v1909_v11 }
 0x488   :  { %v1920_v28 = vcombine.high %v1916_v14, %v1916_v14  ;;  %v2080_v29 = vsel %vm157_vm1, %v1967_v5, %v2045_v17  ;;  %v1989_v31 = vrot.slane %v1895_v2, %v3730_v12  ;;  %v1993_v32 = vrot.slane %v1909_v11, %v3730_v12 }
 0x489   :  { %v2081_v30 = vsel %vm157_vm1, %v1969_v15, %v2049_v21  ;;  %v2152_v33 = vcombine.low %v2078_v26, %v2079_v24  ;;  %v1997_v35 = vrot.slane %v1917_v20, %v3730_v12  ;;  %v2001_v10 = vrot.slane %v1919_v27, %v3730_v12 }
 0x48a   :  { %v2153_v34 = vcombine.low %v2080_v29, %v2081_v30  ;;  %v2005_v45 = vrot.slane %v1902_v3, %v3730_v12  ;;  %v2009_v37 = vrot.slane %v1916_v14, %v3730_v12  ;;  %v2013_v39 = vrot.slane %v1918_v25, %v3730_v12 }
 0x48b   :  { %v2017_v40 = vrot.slane %v1920_v28, %v3730_v12  ;;  %v2066_v42 = vsel %vm157_vm1, %v1895_v2, %v1989_v31  ;;  %v2067_v43 = vsel %vm157_vm1, %v1909_v11, %v1993_v32  ;;  %v2068_v44 = vsel %vm157_vm1, %v1917_v20, %v1997_v35 }
 0x48c   :  { %v2069_v46 = vsel %vm157_vm1, %v1919_v27, %v2001_v10  ;;  %v2070_v47 = vsel %vm157_vm1, %v1902_v3, %v2005_v45  ;;  %v2071_v38 = vsel %vm157_vm1, %v1916_v14, %v2009_v37  ;;  %v2072_v49 = vsel %vm157_vm1, %v1918_v25, %v2013_v39  ;;  %v2084_v25 = vld [vmem:[%s4079_s9 + $0x10] sm:$0xff] }
 0x48d   :  { %v2073_v50 = vsel %vm157_vm1, %v1920_v28, %v2017_v40  ;;  %v2101_v51 = vcombine.low %v2066_v42, %v2067_v43  ;;  %v2118_v52 = vcombine.low %v2070_v47, %v2071_v38  ;;  %v2102_v12 = vcombine.low %v2068_v44, %v2069_v46  ;;  %v2510_v40 = vld [vmem:[%s4081_s11 + $0x4] sm:$0xf]  ;;  %v2509_v42 = vld [vmem:[%s4081_s11] sm:$0xf]  ;;  %v2970_v43 = vld [vmem:[#allocation14] ss:$0 sm:$0xff] }
 0x48e   :  { %v2119_v53 = vcombine.low %v2072_v49, %v2073_v50  ;;  %v2135_v58 = vcombine.low %v2074_v19, %v2075_v22  ;;  %v2160_v59 = vrot.slane %v2152_v33, %v3711_v54  ;;  %v2077_v61 = vsel %vm157_vm1, %v1968_v7, %v2033_v18  ;;  %3158 = vmatprep.subr.msk.mxu0 %vm782_vm4, %v2510_v40 }
 0x48f   :  { %v2167_v62 = vrot.slane %v2153_v34, %v3711_v54  ;;  %v2109_v63 = vrot.slane %v2101_v51, %v3711_v54  ;;  %v2126_v55 = vrot.slane %v2118_v52, %v3711_v54  ;;  %v2116_v56 = vrot.slane %v2102_v12, %v3711_v54  ;;  %3159 = vmatpush3.msk.msra.mxu0 %vm782_vm4, %v2510_v40 }
 0x490   :  { %v2133_v0 = vrot.slane %v2119_v53, %v3711_v54  ;;  %v2136_v1 = vcombine.low %v2076_v23, %v2077_v61  ;;  %v2143_v5 = vrot.slane %v2135_v58, %v3711_v54  ;;  %3166 = vmatprep.subr.msk.mxu0 %vm782_vm4, %v2509_v42 }
 0x491   :  { %v2168_v2 = vcombine.low %v2160_v59, %v2167_v62  ;;  %v2117_v3 = vcombine.low %v2109_v63, %v2116_v56 }
 0x492   :  { %v2134_v4 = vcombine.low %v2126_v55, %v2133_v0  ;;  %v2150_v8 = vrot.slane %v2136_v1, %v3711_v54 }
 0x493   :  { %v2173_v9 = vrot.slane %v2168_v2, 7  ;;  %v2169_v7 = vrot.slane %v2117_v3, 7 }
 0x494   :  { %v2170_v48 = vrot.slane %v2134_v4, 7  ;;  %v2151_v11 = vcombine.low %v2143_v5, %v2150_v8 }
 0x495   :  { %v2179_v15 = vsel %vm157_vm1, 0.0, %v2169_v7  ;;  %v2182_v20 = vsel %vm157_vm1, %v2173_v9, 0.0 }
 0x496   :  { %v2171_v14 = vsel %vm157_vm1, %v2169_v7, %v2170_v48  ;;  %v2181_v16 = vsel %vm157_vm1, %v2170_v48, 0.0  ;;  %v2187_v17 = vrot.slane %v2179_v15, 1  ;;  %v2172_v21 = vrot.slane %v2151_v11, 7 }
 0x497   :  { %v2188_v18 = vrot.slane %v2171_v14, 1  ;;  %v2190_v19 = vrot.slane %v2181_v16, 1  ;;  %v2195_v26 = vrot.slane %v2182_v20, 1  ;;  %v2384_v31 = vrot.slane %v2171_v14, 2 }
 0x498   :  { %v2174_v23 = vsel %vm157_vm1, %v2172_v21, %v2173_v9  ;;  %v2180_v24 = vsel %vm157_vm1, 0.0, %v2172_v21  ;;  %v2383_v32 = vrot.slane %v2179_v15, 2  ;;  %v2386_v33 = vrot.slane %v2181_v16, 2 }
 0x499   :  { %v2189_v22 = vsel %vm176_vm3, %v2187_v17, %v2188_v18  ;;  %v2191_v54 = vsel %vm176_vm3, %v2188_v18, %v2190_v19  ;;  %v2192_v27 = vrot.slane %v2180_v24, 1  ;;  %v2193_v28 = vrot.slane %v2174_v23, 1 }
 0x49a   :  { %3136 = vmatprep.mubr.msk.f32.mxu1 %vm1192_vm5, %v2189_v22  ;;  %v2389_v34 = vrot.slane %v2174_v23, 2  ;;  %v2388_v35 = vrot.slane %v2180_v24, 2  ;;  %v2387_v10 = vsel %vm196_vm0, %v2384_v31, %v2386_v33  ;;  %v2391_v45 = vrot.slane %v2182_v20, 2 }
 0x49b   :  { %3137 = vmatmul.mubr.msk.f32.vlgmr.msra.gmra.mrb[12].mxu1 %vm1192_vm5, %v2191_v54  ;;  %v2194_v29 = vsel %vm176_vm3, %v2192_v27, %v2193_v28  ;;  %v2196_v30 = vsel %vm176_vm3, %v2193_v28, %v2195_v26 }
 0x49c   :  { %3143 = vmatpush3.msra.mxu1 %v3903_v36  ;;  %3139 = vmatprep.mubr.msk.f32.mxu1 %vm1192_vm5, %v2194_v29  ;;  %v2385_v36 = vsel %vm196_vm0, %v2383_v32, %v2384_v31  ;;  %v2390_v37 = vsel %vm196_vm0, %v2388_v35, %v2389_v34  ;;  %v2392_v39 = vsel %vm196_vm0, %v2389_v34, %v2391_v45 }
 0x49d   :  { %3150 = vmatprep.subr.mxu1 %v2084_v25 }
 0x49f   :  { %3140 = vmatmul.mubr.msk.f32.gmra.mrb[14].mxu1 %vm1192_vm5, %v2196_v30 }
 0x4a0   :  { %3144 = vmatprep.mubr.msk.f32.mxu1 %vm1192_vm5, %v2179_v15 }
 0x4a3   :  { %3145 = vmatmul.mubr.msk.f32.vlgmr.msra.gmra.mrb[12].mxu1 %vm1192_vm5, %v2171_v14 }
 0x4a4   :  { %3151 = vmatpush3.msra.mxu1 %v2084_v25  ;;  %3147 = vmatprep.mubr.msk.f32.mxu1 %vm1192_vm5, %v2180_v24 }
 0x4a7   :  { %3148 = vmatmul.mubr.msk.f32.gmra.mrb[14].mxu1 %vm1192_vm5, %v2174_v23 }
 0x4a8   :  { %3152 = vmatprep.mubr.msk.f32.mxu1 %vm1192_vm5, %v2385_v36 }
 0x4ab   :  { %3153 = vmatmul.mubr.msk.f32.vlgmr.msra.gmra.mrb[12].mxu1 %vm1192_vm5, %v2387_v10 }
 0x4ac   :  { %3155 = vmatprep.mubr.msk.f32.mxu1 %vm1192_vm5, %v2390_v37 }
 0x4af   :  { %3156 = vmatmul.mubr.msk.f32.gmra.mrb[14].mxu1 %vm1192_vm5, %v2392_v39 }
 0x57e   :  { %v3154_v44 = vpop.f32.mrb[12].mxu1 }
 0x57f   :  { %v2498_v46 = vadd.f32 %v3154_v44, %v2970_v43  ;;  %v2467_v47 = vpop.f32.mrb[13].mxu1 }
 0x580   :  { %v2497_v38 = vadd.f32 %v2970_v43, %v2467_v47 }
 0x581   :  { %v2502_v49 = vmax.f32 %v2498_v46, 0.0 }
 0x582   :  { %v2501_v50 = vmax.f32 %v2497_v38, 0.0  ;;  %v3157_v51 = vpop.f32.mrb[14].mxu1 }
 0x583   :  { %v2506_v52 = vadd.f32 %v2502_v49, %v3713_v57  ;;  %v2500_v53 = vadd.f32 %v3157_v51, %v2970_v43  ;;  %v2477_v12 = vpop.f32.mrb[15].mxu1 }
 0x584   :  { %v2505_v58 = vadd.f32 %v2501_v50, %v3715_v60  ;;  %v2499_v59 = vadd.f32 %v2970_v43, %v2477_v12 }
 0x585   :  { %v2517_v61 = vrot.slane %v2506_v52, 7  ;;  %v2504_v62 = vmax.f32 %v2500_v53, 0.0 }
 0x586   :  { %v2516_v63 = vrot.slane %v2505_v58, 7  ;;  %v2503_v55 = vmax.f32 %v2499_v59, 0.0 }
 0x587   :  { %v2528_v56 = vsel %vm157_vm1, %v2517_v61, 0.0  ;;  %v2508_v0 = vadd.f32 %v2504_v62, %v3726_v6 }
 0x588   :  { %v2537_v1 = vrot.slane %v2528_v56, 1  ;;  %v2739_v2 = vrot.slane %v2528_v56, 2  ;;  %v2518_v3 = vsel %vm157_vm1, %v2516_v63, %v2517_v61  ;;  %v2526_v4 = vsel %vm157_vm1, 0.0, %v2516_v63 }
 0x589   :  { %v2534_v57 = vrot.slane %v2526_v4, 1  ;;  %v2736_v5 = vrot.slane %v2526_v4, 2  ;;  %v2520_v8 = vrot.slane %v2508_v0, 7  ;;  %v2507_v60 = vadd.f32 %v2503_v55, %v3732_v13  ;;  %v2511_v13 = vld [vmem:[%s4081_s11 + $0x8] sm:$0xf]  ;;  %s3469_s11 = smov [#allocation16]  }
 0x58a   :  { %v2535_v9 = vrot.slane %v2518_v3, 1  ;;  %v2737_v7 = vrot.slane %v2518_v3, 2  ;;  %s2875_s5 = sshll.u32 %s3469_s11, 4  ;;  %s2876_s5 = int_to_ptr.vmem [resolvable:$true] %s2875_s5 }
 0x58b   :  { %v2529_v48 = vsel %vm157_vm1, %v2520_v8, 0.0  ;;  %v2519_v11 = vrot.slane %v2507_v60, 7  ;;  %s3419_s0 = scalar_lea.vmem %s2876_s5, 128  ;;  %p3424_p9 = scmp.lt.s32.totalorder %s2876_s5, %s2876_s5 }
 0x58c   :  { %v2542_v14 = vrot.slane %v2529_v48, 1  ;;  %v2744_v15 = vrot.slane %v2529_v48, 2  ;;  %v2536_v6 = vsel %vm176_vm3, %v2534_v57, %v2535_v9  ;;  %v2538_v16 = vsel %vm176_vm3, %v2535_v9, %v2537_v1  ;;  %p3420_p8 = scmp.ne.s32.totalorder %s2876_s5, %s3419_s0  ;;  %p3425_p10 = scmp.lt.s32.totalorder %s3419_s0, %s3419_s0 }
 0x58d   :  { %v2521_v17 = vsel %vm157_vm1, %v2519_v11, %v2520_v8  ;;  %v2527_v18 = vsel %vm157_vm1, 0.0, %v2519_v11  ;;  %3160 = vmatprep.mubr.msk.f32.mxu0 %vm777_vm11, %v2536_v6  ;;  %v2738_v19 = vsel %vm196_vm0, %v2736_v5, %v2737_v7  ;;  %v2740_v20 = vsel %vm196_vm0, %v2737_v7, %v2739_v2 }
 0x58e   :  { %v2539_v21 = vrot.slane %v2527_v18, 1  ;;  %v2741_v22 = vrot.slane %v2527_v18, 2  ;;  %3161 = vmatmul.mubr.msk.f32.vlgmr.msra.gmra.mrb[6].mxu0 %vm777_vm11, %v2538_v16  ;;  %v2540_v54 = vrot.slane %v2521_v17, 1  ;;  %v2742_v23 = vrot.slane %v2521_v17, 2  ;;  %p3426_p11 = por %p3425_p10, %p3424_p9 }
 0x58f   :  { %3167 = vmatpush3.msk.msra.mxu0 %vm782_vm4, %v2509_v42 }
 0x590   :  { %v2541_v24 = vsel %vm176_vm3, %v2539_v21, %v2540_v54  ;;  %v2543_v26 = vsel %vm176_vm3, %v2540_v54, %v2542_v14  ;;  %3174 = vmatprep.subr.msk.mxu0 %vm782_vm4, %v2511_v13  ;;  %v2743_v25 = vsel %vm196_vm0, %v2741_v22, %v2742_v23  ;;  %v2745_v27 = vsel %vm196_vm0, %v2742_v23, %v2744_v15  ;;  %p3427_p12 = pnand %p3426_p11, %p3420_p8 }
 0x591   :  { %3163 = vmatprep.mubr.msk.f32.mxu0 %vm777_vm11, %v2541_v24 }
 0x592   :  { %3164 = vmatmul.mubr.msk.f32.gmra.mrb[8].mxu0 %vm777_vm11, %v2543_v26 }
 0x593   :  { %3168 = vmatprep.mubr.msk.f32.mxu0 %vm777_vm11, %v2526_v4 }
 0x596   :  { %3169 = vmatmul.mubr.msk.f32.vlgmr.msra.gmra.mrb[6].mxu0 %vm777_vm11, %v2518_v3 }
 0x597   :  { %3175 = vmatpush3.msk.msra.mxu0 %vm782_vm4, %v2511_v13  ;;  %3171 = vmatprep.mubr.msk.f32.mxu0 %vm777_vm11, %v2527_v18 }
 0x59a   :  { %3172 = vmatmul.mubr.msk.f32.gmra.mrb[8].mxu0 %vm777_vm11, %v2521_v17 }
 0x59b   :  { %3176 = vmatprep.mubr.msk.f32.mxu0 %vm777_vm11, %v2738_v19 }
 0x59e   :  { %3177 = vmatmul.mubr.msk.f32.vlgmr.msra.gmra.mrb[6].mxu0 %vm777_vm11, %v2740_v20 }
 0x59f   :  { %3179 = vmatprep.mubr.msk.f32.mxu0 %vm777_vm11, %v2743_v25 }
 0x5a2   :  { %3180 = vmatmul.mubr.msk.f32.gmra.mrb[8].mxu0 %vm777_vm11, %v2745_v27 }
 0x5a3   :  { %3430 = shalt.err (!%p3427_p12)
}
 0x5a4   :  { %s3431_s29 = scalar_lea.hbm %s4084_s14, 128 }
 0x5a5   :  { %p3432_p13 = scmp.ne.s32.totalorder %s4084_s14, %s3431_s29  ;;  %p3435_p0 = scmp.lt.u32.totalorder %s3431_s29, %s4084_s14 }
 0x5a7   :  { %p3437_p1 = pnand %p3435_p0, %p3432_p13 }
 0x5a9   :  { %3440 = shalt.err (!%p3437_p1)
}
 0x5aa   :  { %2881 = dma.vmem_to_hbm [thread:$0]  %s2876_s5, 128, %s4084_s14, [#allocation4], %s3460_s1, %s3460_s1, %s3461_s26   ;;  %v2858_v28 = vand.u32 127, %v514_v41 }
 0x5ab   :  { %v2986_v29 = vld [vmem:[%s4082_s12] ss:$0 sm:$0xff] }
 0x5ac   :  { %vm2859_vm0 = vcmp.eq.s32.totalorder %v2858_v28, 0 }
 0x671   :  { %v3178_v30 = vpop.f32.mrb[6].mxu0 }
 0x672   :  { %v2854_v31 = vadd.f32 %v3178_v30, %v2986_v29  ;;  %v2823_v32 = vpop.f32.mrb[7].mxu0 }
 0x673   :  { %v2853_v33 = vadd.f32 %v2986_v29, %v2823_v32 }
 0x674   :  { %v2861_v36 = vsel %vm2859_vm0, -inf, %v2854_v31 }
 0x675   :  { %2865 = vst.msk [vmem:[%s4083_s13 + $0x8] sm:$0xff] %vm187_vm2, %v2861_v36  ;;  %v2860_v34 = vsel %vm2859_vm0, -inf, %v2853_v33  ;;  %v3181_v35 = vpop.f32.mrb[8].mxu0 }
 0x676   :  { %2864 = vst.msk [vmem:[%s4083_s13] sm:$0xff] %vm187_vm2, %v2860_v34  ;;  %v2856_v41 = vadd.f32 %v3181_v35, %v2986_v29  ;;  %v2833_v10 = vpop.f32.mrb[9].mxu0 }
 0x677   :  { %v2855_v45 = vadd.f32 %v2986_v29, %v2833_v10 }
 0x678   :  { %v2863_v37 = vsel %vm2859_vm0, -inf, %v2856_v41 }
 0x679   :  { %2867 = vst.msk [vmem:[%s4083_s13 + $0x18] sm:$0xff] %vm187_vm2, %v2863_v37  ;;  %v2862_v39 = vsel %vm2859_vm0, -inf, %v2855_v45 }
 0x67a   :  { %2866 = vst.msk [vmem:[%s4083_s13 + $0x10] sm:$0xff] %vm187_vm2, %v2862_v39 }
 0x67b   :  { %3451 = dma.done.wait [#allocation4], 128  }
 0x67c   :  { %3452 = vsyncadd [#allocation4], 4294967168 }
 0x67d   :  { %2887 = vsyncpa [#allocation3], 1 }
 0x67e   :  { %2888 = vsyncpa [#allocation6], 1 }
 0x67f   :  { %2889 = vsyncpa [#allocation9], 1 }
 0x680   :  { %2890 = vsyncpa [#allocation12], 1 }
 0x681   :  { %2891 = vsyncpa [#allocation15], 1 }
 0x682   :  { %2892 = vsyncpa [#allocation4], 1 }

</bundles_post_ra>
